<compile_context>
chip_gen: v7x
topology: tpu7x:2x2x1
jax: 0.10.0
libtpu: 0.0.40
codegen_flags: <defaults>
</compile_context>

<pallas_src>
import jax
import jax.numpy as jnp
from jax.experimental import pallas as pl
from jax.experimental.pallas import tpu as pltpu

LANES = 128
IN_F, HID_F, OUT_F = 4, 16, 3
OUT_PAD = 8  # lane width of the kernel's output slab (>= OUT_F; equals full array dim)

# Row layout of the packed parameter slab (all rows 128 lanes wide, zero padded).
W1_ROW0 = 0                   # rows 0..3    : W1[k, :16]
B1_ROW = 4                    # row  4       : b1[:16]
B2_ROW = 5                    # row  5       : b2[:3]
W2_ROW0 = 8                   # rows 8..135  : W2 zero-padded to (128, 128)
PARAM_ROWS = W2_ROW0 + LANES  # 136 (multiple of 8)


def iris_mlp_kernel(x_ref, p_ref, o_ref):
    x = x_ref[...]                                                # (tb, 4) f32

    # Layer 1 on the MXU (K=4; Mosaic pads the contraction).
    # CORRECTNESS INVARIANT: b1 lanes 16..127 are exactly 0 (see pack_params), so
    # ReLU keeps the padded hidden lanes at exactly 0.
    w1 = p_ref[W1_ROW0:W1_ROW0 + IN_F, :]                         # (4, 128)
    b1 = p_ref[B1_ROW:B1_ROW + 1, :]                              # (1, 128)
    h = jnp.maximum(
        jnp.dot(x, w1, preferred_element_type=jnp.float32) + b1, 0.0)

    # Layer 2 on the MXU against the zero-padded stationary (128, 128) W2.
    # CORRECTNESS INVARIANT: W2 rows 16..127 and cols 3..127 (and b2 lanes 3..127)
    # are exactly 0, so padded lanes contribute nothing to the logits.
    w2 = p_ref[W2_ROW0:W2_ROW0 + LANES, :]                        # (128, 128)
    b2 = p_ref[B2_ROW:B2_ROW + 1, :]                              # (1, 128)
    out = jnp.dot(h, w2, preferred_element_type=jnp.float32) + b2  # (tb, 128)

    # Store only an 8-lane slab (real logits live in lanes 0..2): ~16x less HBM
    # writeback than a 128-lane output.
    o_ref[...] = out[:, :OUT_PAD]


def _round_up(n, m):
    return ((n + m - 1) // m) * m


def pack_params(w1, b1, w2, b2):
    """Pack all weights/biases into one zero-padded (PARAM_ROWS, 128) f32 slab.

    NOTE: the kernel relies on every element outside the explicitly-set ranges
    being exactly zero (padded hidden lanes stay 0 through ReLU and the padded
    W2/b2 entries contribute nothing).  Do not reuse the spare rows/lanes.
    """
    w1 = jnp.asarray(w1, jnp.float32).reshape(IN_F, HID_F)
    b1 = jnp.asarray(b1, jnp.float32).reshape(HID_F)
    w2 = jnp.asarray(w2, jnp.float32).reshape(HID_F, OUT_F)
    b2 = jnp.asarray(b2, jnp.float32).reshape(OUT_F)
    p = jnp.zeros((PARAM_ROWS, LANES), jnp.float32)
    p = p.at[W1_ROW0:W1_ROW0 + IN_F, :HID_F].set(w1)
    p = p.at[B1_ROW, :HID_F].set(b1)
    p = p.at[B2_ROW, :OUT_F].set(b2)
    p = p.at[W2_ROW0:W2_ROW0 + HID_F, :OUT_F].set(w2)
    return p


def iris_forward(x, w1, b1, w2, b2, *, block_rows=4096):
    """relu(x @ w1 + b1) @ w2 + b2 for x of shape (B, 4)."""
    x = jnp.asarray(x, jnp.float32)
    B = x.shape[0]

    # Batch tile: multiple of 8 sublanes; aim for >= 2 grid steps (so both v7x
    # TensorCores get work) while capping the tile for VMEM / small batches.
    Bp8 = _round_up(max(B, 1), 8)
    tb_cap = _round_up(block_rows, 8)
    tb = min(tb_cap, max(8, _round_up(pl.cdiv(Bp8, 2), 8)))
    Bp = _round_up(Bp8, tb)
    if Bp != B:
        x = jnp.pad(x, ((0, Bp - B), (0, 0)))

    params = pack_params(w1, b1, w2, b2)

    out_padded = pl.pallas_call(
        iris_mlp_kernel,
        out_shape=jax.ShapeDtypeStruct((Bp, OUT_PAD), jnp.float32),
        grid_spec=pltpu.PrefetchScalarGridSpec(
            num_scalar_prefetch=0,
            grid=(Bp // tb,),
            in_specs=[
                pl.BlockSpec((tb, IN_F), lambda i: (i, 0)),           # batch tile
                pl.BlockSpec((PARAM_ROWS, LANES), lambda i: (0, 0)),  # resident params
            ],
            out_specs=pl.BlockSpec((tb, OUT_PAD), lambda i: (i, 0)),  # narrow output slab
        ),
        compiler_params=pltpu.CompilerParams(
            dimension_semantics=("parallel",)),
    )(x, params)

    # NOTE: padded batch rows hold relu(b1)@W2 + b2 garbage; always slice before
    # any reduction over the output.
    return out_padded[:B, :OUT_F]


def init_params(key):
    # Deterministic init mimicking nn.Linear default: U(-1/sqrt(fan_in), 1/sqrt(fan_in)).
    k1, k2, k3, k4 = jax.random.split(key, 4)
    lim1 = 1.0 / jnp.sqrt(4.0)
    lim2 = 1.0 / jnp.sqrt(16.0)
    # Stored transposed vs PyTorch (fc.weight is (out, in); we use (in, out)).
    w1 = jax.random.uniform(k1, (IN_F, HID_F), jnp.float32, -lim1, lim1)
    b1 = jax.random.uniform(k2, (1, HID_F), jnp.float32, -lim1, lim1)
    w2 = jax.random.uniform(k3, (HID_F, OUT_F), jnp.float32, -lim2, lim2)
    b2 = jax.random.uniform(k4, (1, OUT_F), jnp.float32, -lim2, lim2)
    return w1, b1, w2, b2


def _reference(x, w1, b1, w2, b2):
    hp = jax.lax.Precision.HIGHEST
    h = jnp.maximum(jnp.dot(x, w1, precision=hp) + b1, 0.0)
    return jnp.dot(h, w2, precision=hp) + b2


if __name__ == "__main__":
    key = jax.random.PRNGKey(0)
    kx, kp = jax.random.split(key)
    w1, b1, w2, b2 = init_params(kp)

    fwd = jax.jit(iris_forward)

    # Batched call: with B=2048 and block_rows=4096 the wrapper picks tb=1024,
    # giving a 2-step "parallel" grid (both v7x TensorCores busy).
    B = 2048
    x = jax.random.normal(kx, (B, IN_F), jnp.float32)
    out = jax.block_until_ready(fwd(x, w1, b1, w2, b2))
    assert out.shape == (B, OUT_F)
    assert jnp.allclose(out, _reference(x, w1, b1, w2, b2), atol=1e-4, rtol=1e-4)

    # Small, non-multiple-of-tile batch exercises the pad + slice path.
    x_small = jax.random.normal(kx, (7, IN_F), jnp.float32)
    out_small = jax.block_until_ready(fwd(x_small, w1, b1, w2, b2))
    assert out_small.shape == (7, OUT_F)
    assert jnp.allclose(out_small, _reference(x_small, w1, b1, w2, b2),
                        atol=1e-4, rtol=1e-4)

    print("KERNEL_OK")
</pallas_src>

<mosaic_0001>
module attributes {stable_mosaic.version = 11 : i64} {
  func.func @iris_mlp_kernel(%arg0: i32, %arg1: memref<1024x4xf32, #tpu.memory_space<vmem>>, %arg2: memref<136x128xf32, #tpu.memory_space<vmem>>, %arg3: memref<1024x8xf32, #tpu.memory_space<vmem>>) attributes {dimension_semantics = [#tpu.dimension_semantics<parallel>], iteration_bounds = array<i64: 2>, scalar_prefetch = 0 : i64, scratch_operands = 0 : i64, tpu.core_type = #tpu.core_type<tc>, window_params = [{transform_indices = @transform_0, window_bounds = array<i64: 1024, 4>}, {pipeline_mode = #tpu.pipeline_mode<synchronous>, transform_indices = @transform_1, window_bounds = array<i64: 136, 128>}, {transform_indices = @transform_2, window_bounds = array<i64: 1024, 8>}]} {
    %c0 = arith.constant 0 : index
    %c0_0 = arith.constant 0 : index
    %0 = vector.load %arg1[%c0, %c0_0] : memref<1024x4xf32, #tpu.memory_space<vmem>>, vector<1024x4xf32>
    %c0_1 = arith.constant 0 : index
    %c0_2 = arith.constant 0 : index
    %1 = vector.load %arg2[%c0_1, %c0_2] : memref<136x128xf32, #tpu.memory_space<vmem>>, vector<4x128xf32>
    %c4 = arith.constant 4 : index
    %c0_3 = arith.constant 0 : index
    %2 = vector.load %arg2[%c4, %c0_3] : memref<136x128xf32, #tpu.memory_space<vmem>>, vector<1x128xf32>
    %cst = arith.constant dense<0.000000e+00> : vector<1024x128xf32>
    %3 = tpu.matmul %0, %1, %cst {dimension_numbers = #tpu.dot_dimension_numbers<[1], [0], [0], [1], [0, 0, 1, 1], [], []>} : vector<1024x4xf32>, vector<4x128xf32>, vector<1024x128xf32> -> vector<1024x128xf32>
    %4 = vector.broadcast %2 : vector<1x128xf32> to vector<1024x128xf32>
    %5 = arith.addf %3, %4 : vector<1024x128xf32>
    %cst_4 = arith.constant 0.000000e+00 : f32
    %6 = vector.broadcast %cst_4 : f32 to vector<1024x128xf32>
    %7 = arith.maximumf %5, %6 : vector<1024x128xf32>
    %c8 = arith.constant 8 : index
    %c0_5 = arith.constant 0 : index
    %8 = vector.load %arg2[%c8, %c0_5] : memref<136x128xf32, #tpu.memory_space<vmem>>, vector<128x128xf32>
    %c5 = arith.constant 5 : index
    %c0_6 = arith.constant 0 : index
    %9 = vector.load %arg2[%c5, %c0_6] : memref<136x128xf32, #tpu.memory_space<vmem>>, vector<1x128xf32>
    %cst_7 = arith.constant dense<0.000000e+00> : vector<1024x128xf32>
    %10 = tpu.matmul %7, %8, %cst_7 {dimension_numbers = #tpu.dot_dimension_numbers<[1], [0], [0], [1], [0, 0, 1, 1], [], []>} : vector<1024x128xf32>, vector<128x128xf32>, vector<1024x128xf32> -> vector<1024x128xf32>
    %11 = vector.broadcast %9 : vector<1x128xf32> to vector<1024x128xf32>
    %12 = arith.addf %10, %11 : vector<1024x128xf32>
    %13 = vector.extract_strided_slice %12 {offsets = [0, 0], sizes = [1024, 8], strides = [1, 1]} : vector<1024x128xf32> to vector<1024x8xf32>
    %c0_8 = arith.constant 0 : index
    %c0_9 = arith.constant 0 : index
    %14 = vector.load %arg3[%c0_8, %c0_9] : memref<1024x8xf32, #tpu.memory_space<vmem>>, vector<1024x8xf32>
    tpu.vector_store %arg3[%c0_8, %c0_9], %13 {strides = array<i32>} : memref<1024x8xf32, #tpu.memory_space<vmem>>, vector<1024x8xf32>,
    return
  }
  func.func @transform_0(%arg0: i32) -> (i32, i32) {
    %c0_i32 = arith.constant 0 : i32
    %c0_i32_0 = arith.constant 0 : i32
    return %arg0, %c0_i32 : i32, i32
  }
  func.func @transform_1(%arg0: i32) -> (i32, i32) {
    %c0_i32 = arith.constant 0 : i32
    %c0_i32_0 = arith.constant 0 : i32
    %c0_i32_1 = arith.constant 0 : i32
    return %c0_i32, %c0_i32_0 : i32, i32
  }
  func.func @transform_2(%arg0: i32) -> (i32, i32) {
    %c0_i32 = arith.constant 0 : i32
    %c0_i32_0 = arith.constant 0 : i32
    return %arg0, %c0_i32 : i32, i32
  }
}

</mosaic_0001>

<bundles_post_ra>
// kernel: iris_forward.1
= control target key start
LH: loop header
LB: loop body
LE: loop exit
PB: predicated region body
PF: predicated region fallthrough
CT: control target
= control target key end

     0   :  { %s3327_s9 = smov 0   ;;  %s4197_s0 = inlined_call_operand.vmem [shape: f32[2048,4], index: 0, kind: input, shape index: {}]   ;;  %s4198_s1 = inlined_call_operand.vmem [shape: f32[136,128], index: 1, kind: input, shape index: {}]   ;;  %s4199_s2 = inlined_call_operand.vmem [shape: f32[2048,8], index: 2, kind: output, shape index: {}]  }
   0x1 LB: > { %s2414_s10 = sadd.s32 4294967295, %s3310_s9   ;;  %p2418_p0 = scmp.ge.s32.totalorder %s3310_s9, 1  ;;  %s3310_s9 = sphi %s3327_s9, %s12_s9  }
   0x2   : > { %p113_p1 = scmp.lt.s32.totalorder %s3310_s9, 3 }
   0x4   : > { %p114_p2 = pnand %p2418_p0, %p113_p1 }
   0x5   : > { %v275_v0 = vld [vmem:[%s4198_s1] sm:$0xf] (!%p114_p2)  ;;  %vm666_vm0 = vcmask (!%p114_p2), 1043456   ;;  %s2419_s13 = sshll.u32 (!%p114_p2), %s2414_s10, 7  ;;  %vm281_vm1 = vcmask (!%p114_p2), 31744   ;;  %v1503_v38 = vld [vmem:[%s4198_s1 + $0x8] sm:$0xff] (!%p114_p2) }
   0x6   : > { %117 = sbr.rel (%p114_p2) target bundleno = 704 (0x2c0), region = 28  ;;  %2829 = vmatprep.subr.msk.mxu0 (!%p114_p2), %vm666_vm0, %v275_v0  ;;  %p136_p3 = scmp.lt.s32.totalorder (!%p114_p2), %s2419_s13, 255  ;;  %v1504_v39 = vld [vmem:[%s4198_s1 + $0x10] sm:$0xff] (!%p114_p2)  ;;  %v1505_v43 = vld [vmem:[%s4198_s1 + $0x18] sm:$0xff] (!%p114_p2)  ;;  %v1506_v44 = vld [vmem:[%s4198_s1 + $0x20] sm:$0xff] (!%p114_p2)  ;;  %vm2229_vm2 = vcmask (!%p114_p2), 64512  }
   0x7   : > { %2830 = vmatpush3.msk.msra.mxu0 (!%p114_p2), %vm666_vm0, %v275_v0  ;;  %v3247_v40 = vpack.c.bf16 (!%p114_p2), %v1504_v39, %v1503_v38  ;;  %v3251_v45 = vpack.c.bf16 (!%p114_p2), %v1506_v44, %v1505_v43  ;;  %v1507_v48 = vld [vmem:[%s4198_s1 + $0x28] sm:$0xff] (!%p114_p2)  ;;  %v1508_v49 = vld [vmem:[%s4198_s1 + $0x30] sm:$0xff] (!%p114_p2)  ;;  %v1509_v53 = vld [vmem:[%s4198_s1 + $0x38] sm:$0xff] (!%p114_p2) }
   0x8   : > { %v3255_v50 = vpack.c.bf16 (!%p114_p2), %v1508_v49, %v1507_v48  ;;  %v1510_v54 = vld [vmem:[%s4198_s1 + $0x40] sm:$0xff] (!%p114_p2)  ;;  %v1511_v58 = vld [vmem:[%s4198_s1 + $0x48] sm:$0xff] (!%p114_p2)  ;;  %v1512_v59 = vld [vmem:[%s4198_s1 + $0x50] sm:$0xff] (!%p114_p2) }
   0x9   : > { %3279 = vmatprep.subr.bf16.mxu1 (!%p114_p2), %v3247_v40  ;;  %3248 = vmatprep.subr.bf16.mxu0 (!%p114_p2), %v3247_v40  ;;  %v3259_v55 = vpack.c.bf16 (!%p114_p2), %v1510_v54, %v1509_v53  ;;  %v3263_v61 = vpack.c.bf16 (!%p114_p2), %v1512_v59, %v1511_v58  ;;  %v1513_v63 = vld [vmem:[%s4198_s1 + $0x58] sm:$0xff] (!%p114_p2)  ;;  %v1514_v0 = vld [vmem:[%s4198_s1 + $0x60] sm:$0xff] (!%p114_p2) }
   0xa   : > { %3287 = vmatpush3.bf16.msra.mxu1 (!%p114_p2), %v3247_v40 }
   0xb   : > { %3280 = vmatprep.subr.bf16.mxu1 (!%p114_p2), %v3251_v45 }
   0xd   : > { %s4201_s13 = smov (!%p136_p3, %s2419_s13), 255 }
   0xe   : > { %s2420_s14 = sshll.u32 %s4201_s13, 3  ;;  %3288 = vmatpush3.bf16.msra.mxu1 %v3251_v45 }
   0xf   : > { %s3346_s17 = scalar_lea.vmem %s4197_s0, %s2420_s14  ;;  %3281 = vmatprep.subr.bf16.mxu1 %v3255_v50  ;;  %s3800_s3 = scalar_lea.vmem %s4199_s2, %s2420_s14 }
  0x10   : > { %v147_v1 = vld [vmem:[%s3346_s17] sm:$0xff]  ;;  %v148_v2 = vld [vmem:[%s3346_s17 + $0x8] sm:$0xff]  ;;  %v149_v3 = vld [vmem:[%s3346_s17 + $0x10] sm:$0xff] }
  0x11   : > { %2831 = vmatprep.mubr.msk.f32.mxu0 %vm281_vm1, %v147_v1  ;;  %v150_v4 = vld [vmem:[%s3346_s17 + $0x18] sm:$0xff]  ;;  %v151_v5 = vld [vmem:[%s3346_s17 + $0x20] sm:$0xff]  ;;  %v152_v6 = vld [vmem:[%s3346_s17 + $0x28] sm:$0xff]  ;;  %v3267_v1 = vpack.c.bf16 %v1514_v0, %v1513_v63 }
  0x12   : > { %2832 = vmatmul.mubr.msk.f32.vlgmr.msra.gmra.mrb[0].mxu0 %vm281_vm1, %v148_v2  ;;  %v153_v7 = vld [vmem:[%s3346_s17 + $0x30] sm:$0xff]  ;;  %v154_v8 = vld [vmem:[%s3346_s17 + $0x38] sm:$0xff]  ;;  %v155_v9 = vld [vmem:[%s3346_s17 + $0x40] sm:$0xff]  ;;  %3289 = vmatpush3.bf16.msra.mxu1 %v3255_v50 }
  0x13   : > { %2834 = vmatprep.mubr.msk.f32.mxu0 %vm281_vm1, %v149_v3  ;;  %v156_v10 = vld [vmem:[%s3346_s17 + $0x48] sm:$0xff]  ;;  %v157_v11 = vld [vmem:[%s3346_s17 + $0x50] sm:$0xff]  ;;  %v158_v12 = vld [vmem:[%s3346_s17 + $0x58] sm:$0xff]  ;;  %3250 = vmatpush3.bf16.msra.mxu0 %v3247_v40 }
  0x14   : > { %v159_v13 = vld [vmem:[%s3346_s17 + $0x60] sm:$0xff]  ;;  %v160_v14 = vld [vmem:[%s3346_s17 + $0x68] sm:$0xff]  ;;  %v161_v15 = vld [vmem:[%s3346_s17 + $0x70] sm:$0xff]  ;;  %3252 = vmatprep.subr.bf16.mxu0 %v3251_v45  ;;  %3282 = vmatprep.subr.bf16.mxu1 %v3259_v55 }
  0x15   : > { %v162_v16 = vld [vmem:[%s3346_s17 + $0x78] sm:$0xff]  ;;  %v163_v17 = vld [vmem:[%s3346_s17 + $0x80] sm:$0xff]  ;;  %v164_v18 = vld [vmem:[%s3346_s17 + $0x88] sm:$0xff] }
  0x16   : > { %2835 = vmatmul.mubr.msk.f32.gmra.mrb[2].mxu0 %vm281_vm1, %v150_v4  ;;  %v165_v19 = vld [vmem:[%s3346_s17 + $0x90] sm:$0xff]  ;;  %v166_v20 = vld [vmem:[%s3346_s17 + $0x98] sm:$0xff]  ;;  %v167_v21 = vld [vmem:[%s3346_s17 + $0xa0] sm:$0xff]  ;;  %3290 = vmatpush3.bf16.msra.mxu1 %v3259_v55 }
  0x17   : > { %2837 = vmatprep.mubr.msk.f32.mxu0 %vm281_vm1, %v151_v5  ;;  %v168_v22 = vld [vmem:[%s3346_s17 + $0xa8] sm:$0xff]  ;;  %v169_v23 = vld [vmem:[%s3346_s17 + $0xb0] sm:$0xff]  ;;  %v170_v24 = vld [vmem:[%s3346_s17 + $0xb8] sm:$0xff]  ;;  %3254 = vmatpush3.bf16.msra.mxu0 %v3251_v45 }
  0x18   : > { %v171_v25 = vld [vmem:[%s3346_s17 + $0xc0] sm:$0xff]  ;;  %v172_v26 = vld [vmem:[%s3346_s17 + $0xc8] sm:$0xff]  ;;  %v173_v27 = vld [vmem:[%s3346_s17 + $0xd0] sm:$0xff]  ;;  %3256 = vmatprep.subr.bf16.mxu0 %v3255_v50  ;;  %3283 = vmatprep.subr.bf16.mxu1 %v3263_v61 }
  0x19   : > { %v174_v28 = vld [vmem:[%s3346_s17 + $0xd8] sm:$0xff]  ;;  %v175_v29 = vld [vmem:[%s3346_s17 + $0xe0] sm:$0xff]  ;;  %v176_v30 = vld [vmem:[%s3346_s17 + $0xe8] sm:$0xff] }
  0x1a   : > { %2838 = vmatmul.mubr.msk.f32.gmra.mrb[4].mxu0 %vm281_vm1, %v152_v6  ;;  %v177_v31 = vld [vmem:[%s3346_s17 + $0xf0] sm:$0xff]  ;;  %v178_v32 = vld [vmem:[%s3346_s17 + $0xf8] sm:$0xff]  ;;  %v179_v33 = vld [vmem:[%s3346_s17 + $0x100] sm:$0xff]  ;;  %3291 = vmatpush3.bf16.msra.mxu1 %v3263_v61 }
  0x1b   : > { %2840 = vmatprep.mubr.msk.f32.mxu0 %vm281_vm1, %v153_v7  ;;  %v180_v34 = vld [vmem:[%s3346_s17 + $0x108] sm:$0xff]  ;;  %v181_v35 = vld [vmem:[%s3346_s17 + $0x110] sm:$0xff]  ;;  %v182_v36 = vld [vmem:[%s3346_s17 + $0x118] sm:$0xff]  ;;  %3258 = vmatpush3.bf16.msra.mxu0 %v3255_v50 }
  0x1c   : > { %v183_v37 = vld [vmem:[%s3346_s17 + $0x120] sm:$0xff]  ;;  %v184_v41 = vld [vmem:[%s3346_s17 + $0x128] sm:$0xff]  ;;  %v185_v42 = vld [vmem:[%s3346_s17 + $0x130] sm:$0xff]  ;;  %3260 = vmatprep.subr.bf16.mxu0 %v3259_v55  ;;  %3284 = vmatprep.subr.bf16.mxu1 %v3267_v1 }
  0x1d   : > { %v186_v46 = vld [vmem:[%s3346_s17 + $0x138] sm:$0xff]  ;;  %v187_v47 = vld [vmem:[%s3346_s17 + $0x140] sm:$0xff]  ;;  %v188_v51 = vld [vmem:[%s3346_s17 + $0x148] sm:$0xff] }
  0x1e   : > { %2841 = vmatmul.mubr.msk.f32.gmra.mrb[6].mxu0 %vm281_vm1, %v154_v8  ;;  %v189_v52 = vld [vmem:[%s3346_s17 + $0x150] sm:$0xff]  ;;  %v190_v56 = vld [vmem:[%s3346_s17 + $0x158] sm:$0xff]  ;;  %v191_v57 = vld [vmem:[%s3346_s17 + $0x160] sm:$0xff]  ;;  %3292 = vmatpush3.bf16.msra.mxu1 %v3267_v1 }
  0x1f   : > { %2843 = vmatprep.mubr.msk.f32.mxu0 %vm281_vm1, %v155_v9  ;;  %3262 = vmatpush3.bf16.msra.mxu0 %v3259_v55  ;;  %v192_v60 = vld [vmem:[%s3346_s17 + $0x168] sm:$0xff]  ;;  %v193_v62 = vld [vmem:[%s3346_s17 + $0x170] sm:$0xff]  ;;  %v194_v2 = vld [vmem:[%s3346_s17 + $0x178] sm:$0xff] }
  0x20   : > { %3264 = vmatprep.subr.bf16.mxu0 %v3263_v61  ;;  %v195_v3 = vld [vmem:[%s3346_s17 + $0x180] sm:$0xff]  ;;  %v1515_v4 = vld [vmem:[%s4198_s1 + $0x68] sm:$0xff]  ;;  %v1516_v5 = vld [vmem:[%s4198_s1 + $0x70] sm:$0xff] }
  0x21   : > { %v3271_v6 = vpack.c.bf16 %v1516_v5, %v1515_v4  ;;  %v196_v7 = vld [vmem:[%s3346_s17 + $0x188] sm:$0xff]  ;;  %v197_v8 = vld [vmem:[%s3346_s17 + $0x190] sm:$0xff]  ;;  %v1517_v9 = vld [vmem:[%s4198_s1 + $0x78] sm:$0xff] }
  0x22   : > { %2844 = vmatmul.mubr.msk.f32.gmra.mrb[8].mxu0 %vm281_vm1, %v156_v10  ;;  %v1518_v10 = vld [vmem:[%s4198_s1 + $0x80] sm:$0xff]  ;;  %v224_v38 = vld [vmem:[%s3346_s17 + $0x268] sm:$0xff]  ;;  %v225_v39 = vld [vmem:[%s3346_s17 + $0x270] sm:$0xff] }
  0x23   : > { %2846 = vmatprep.mubr.msk.f32.mxu0 %vm281_vm1, %v157_v11  ;;  %3266 = vmatpush3.bf16.msra.mxu0 %v3263_v61  ;;  %v3275_v11 = vpack.c.bf16 %v1518_v10, %v1517_v9  ;;  %v226_v40 = vld [vmem:[%s3346_s17 + $0x278] sm:$0xff]  ;;  %v229_v43 = vld [vmem:[%s3346_s17 + $0x290] sm:$0xff]  ;;  %v231_v45 = vld [vmem:[%s3346_s17 + $0x2a0] sm:$0xff] }
  0x24   : > { %3268 = vmatprep.subr.bf16.mxu0 %v3267_v1  ;;  %3285 = vmatprep.subr.bf16.mxu1 %v3271_v6  ;;  %v230_v44 = vld [vmem:[%s3346_s17 + $0x298] sm:$0xff]  ;;  %v235_v49 = vld [vmem:[%s3346_s17 + $0x2c0] sm:$0xff]  ;;  %v236_v50 = vld [vmem:[%s3346_s17 + $0x2c8] sm:$0xff] }
  0x25   : > { %3293 = vmatpush3.bf16.msra.mxu1 %v3271_v6  ;;  %v234_v48 = vld [vmem:[%s3346_s17 + $0x2b8] sm:$0xff]  ;;  %v239_v53 = vld [vmem:[%s3346_s17 + $0x2e0] sm:$0xff]  ;;  %v240_v54 = vld [vmem:[%s3346_s17 + $0x2e8] sm:$0xff] }
  0x26   : > { %2847 = vmatmul.mubr.msk.f32.gmra.mrb[10].mxu0 %vm281_vm1, %v158_v12  ;;  %v198_v12 = vld [vmem:[%s3346_s17 + $0x198] sm:$0xff]  ;;  %3286 = vmatprep.subr.bf16.mxu1 %v3275_v11  ;;  %v241_v55 = vld [vmem:[%s3346_s17 + $0x2f0] sm:$0xff]  ;;  %v244_v58 = vld [vmem:[%s3346_s17 + $0x308] sm:$0xff] }
  0x27   : > { %2849 = vmatprep.mubr.msk.f32.mxu0 %vm281_vm1, %v159_v13  ;;  %3270 = vmatpush3.bf16.msra.mxu0 %v3267_v1  ;;  %v199_v13 = vld [vmem:[%s3346_s17 + $0x1a0] sm:$0xff]  ;;  %v245_v59 = vld [vmem:[%s3346_s17 + $0x310] sm:$0xff]  ;;  %v250_v0 = vld [vmem:[%s3346_s17 + $0x338] sm:$0xff] }
  0x28   : > { %3272 = vmatprep.subr.bf16.mxu0 %v3271_v6  ;;  %v247_v61 = vld [vmem:[%s3346_s17 + $0x320] sm:$0xff]  ;;  %v249_v63 = vld [vmem:[%s3346_s17 + $0x330] sm:$0xff]  ;;  %v254_v4 = vld [vmem:[%s3346_s17 + $0x358] sm:$0xff] }
  0x29   : > { %3294 = vmatpush3.bf16.msra.mxu1 %v3275_v11  ;;  %v251_v1 = vld [vmem:[%s3346_s17 + $0x340] sm:$0xff]  ;;  %v257_v9 = vld [vmem:[%s3346_s17 + $0x370] sm:$0xff] }
  0x2a   : > { %2850 = vmatmul.mubr.msk.f32.gmra.mrb[12].mxu0 %vm281_vm1, %v160_v14  ;;  %v200_v14 = vld [vmem:[%s3346_s17 + $0x1a8] sm:$0xff]  ;;  %v255_v5 = vld [vmem:[%s3346_s17 + $0x360] sm:$0xff] }
  0x2b   : > { %2852 = vmatprep.mubr.msk.f32.mxu0 %vm281_vm1, %v161_v15  ;;  %3274 = vmatpush3.bf16.msra.mxu0 %v3271_v6  ;;  %v201_v15 = vld [vmem:[%s3346_s17 + $0x1b0] sm:$0xff] }
  0x2c   : > { %3276 = vmatprep.subr.bf16.mxu0 %v3275_v11 }
  0x2e   : > { %2853 = vmatmul.mubr.msk.f32.gmra.mrb[14].mxu0 %vm281_vm1, %v162_v16  ;;  %v202_v16 = vld [vmem:[%s3346_s17 + $0x1b8] sm:$0xff] }
  0x2f   : > { %2855 = vmatprep.mubr.msk.f32.mxu0 %vm281_vm1, %v163_v17  ;;  %3278 = vmatpush3.bf16.msra.mxu0 %v3275_v11  ;;  %v203_v17 = vld [vmem:[%s3346_s17 + $0x1c0] sm:$0xff] }
  0x32   : > { %2856 = vmatmul.mubr.msk.f32.gmra.mrb[16].mxu0 %vm281_vm1, %v164_v18  ;;  %v204_v18 = vld [vmem:[%s3346_s17 + $0x1c8] sm:$0xff] }
  0x33   : > { %2858 = vmatprep.mubr.msk.f32.mxu0 %vm281_vm1, %v165_v19  ;;  %v205_v19 = vld [vmem:[%s3346_s17 + $0x1d0] sm:$0xff] }
  0x36   : > { %2859 = vmatmul.mubr.msk.f32.gmra.mrb[18].mxu0 %vm281_vm1, %v166_v20  ;;  %v206_v20 = vld [vmem:[%s3346_s17 + $0x1d8] sm:$0xff] }
  0x37   : > { %2861 = vmatprep.mubr.msk.f32.mxu0 %vm281_vm1, %v167_v21  ;;  %v207_v21 = vld [vmem:[%s3346_s17 + $0x1e0] sm:$0xff] }
  0x3a   : > { %2862 = vmatmul.mubr.msk.f32.gmra.mrb[20].mxu0 %vm281_vm1, %v168_v22  ;;  %v208_v22 = vld [vmem:[%s3346_s17 + $0x1e8] sm:$0xff] }
  0x3b   : > { %2864 = vmatprep.mubr.msk.f32.mxu0 %vm281_vm1, %v169_v23  ;;  %v209_v23 = vld [vmem:[%s3346_s17 + $0x1f0] sm:$0xff] }
  0x3e   : > { %2865 = vmatmul.mubr.msk.f32.gmra.mrb[22].mxu0 %vm281_vm1, %v170_v24  ;;  %v210_v24 = vld [vmem:[%s3346_s17 + $0x1f8] sm:$0xff] }
  0x3f   : > { %2867 = vmatprep.mubr.msk.f32.mxu0 %vm281_vm1, %v171_v25  ;;  %v211_v25 = vld [vmem:[%s3346_s17 + $0x200] sm:$0xff] }
  0x42   : > { %2868 = vmatmul.mubr.msk.f32.gmra.mrb[24].mxu0 %vm281_vm1, %v172_v26  ;;  %v212_v26 = vld [vmem:[%s3346_s17 + $0x208] sm:$0xff] }
  0x43   : > { %2870 = vmatprep.mubr.msk.f32.mxu0 %vm281_vm1, %v173_v27  ;;  %v213_v27 = vld [vmem:[%s3346_s17 + $0x210] sm:$0xff] }
  0x46   : > { %2871 = vmatmul.mubr.msk.f32.gmra.mrb[26].mxu0 %vm281_vm1, %v174_v28  ;;  %v214_v28 = vld [vmem:[%s3346_s17 + $0x218] sm:$0xff] }
  0x47   : > { %2873 = vmatprep.mubr.msk.f32.mxu0 %vm281_vm1, %v175_v29  ;;  %v215_v29 = vld [vmem:[%s3346_s17 + $0x220] sm:$0xff] }
  0x4a   : > { %2874 = vmatmul.mubr.msk.f32.gmra.mrb[28].mxu0 %vm281_vm1, %v176_v30  ;;  %v216_v30 = vld [vmem:[%s3346_s17 + $0x228] sm:$0xff] }
  0x4b   : > { %2876 = vmatprep.mubr.msk.f32.mxu0 %vm281_vm1, %v177_v31  ;;  %v217_v31 = vld [vmem:[%s3346_s17 + $0x230] sm:$0xff] }
  0x4e   : > { %2877 = vmatmul.mubr.msk.f32.gmra.mrb[30].mxu0 %vm281_vm1, %v178_v32  ;;  %v218_v32 = vld [vmem:[%s3346_s17 + $0x238] sm:$0xff] }
  0x4f   : > { %2879 = vmatprep.mubr.msk.f32.mxu0 %vm281_vm1, %v179_v33  ;;  %v219_v33 = vld [vmem:[%s3346_s17 + $0x240] sm:$0xff] }
  0x52   : > { %2880 = vmatmul.mubr.msk.f32.gmra.mrb[32].mxu0 %vm281_vm1, %v180_v34  ;;  %v220_v34 = vld [vmem:[%s3346_s17 + $0x248] sm:$0xff] }
  0x53   : > { %2882 = vmatprep.mubr.msk.f32.mxu0 %vm281_vm1, %v181_v35  ;;  %v221_v35 = vld [vmem:[%s3346_s17 + $0x250] sm:$0xff] }
  0x56   : > { %2883 = vmatmul.mubr.msk.f32.gmra.mrb[34].mxu0 %vm281_vm1, %v182_v36  ;;  %v222_v36 = vld [vmem:[%s3346_s17 + $0x258] sm:$0xff] }
  0x57   : > { %2885 = vmatprep.mubr.msk.f32.mxu0 %vm281_vm1, %v183_v37  ;;  %v223_v37 = vld [vmem:[%s3346_s17 + $0x260] sm:$0xff] }
  0x5a   : > { %2886 = vmatmul.mubr.msk.f32.gmra.mrb[36].mxu0 %vm281_vm1, %v184_v41  ;;  %v227_v41 = vld [vmem:[%s3346_s17 + $0x280] sm:$0xff] }
  0x5b   : > { %2888 = vmatprep.mubr.msk.f32.mxu0 %vm281_vm1, %v185_v42  ;;  %v228_v42 = vld [vmem:[%s3346_s17 + $0x288] sm:$0xff] }
  0x5e   : > { %2889 = vmatmul.mubr.msk.f32.gmra.mrb[38].mxu0 %vm281_vm1, %v186_v46  ;;  %v232_v46 = vld [vmem:[%s3346_s17 + $0x2a8] sm:$0xff] }
  0x5f   : > { %2891 = vmatprep.mubr.msk.f32.mxu0 %vm281_vm1, %v187_v47  ;;  %v233_v47 = vld [vmem:[%s3346_s17 + $0x2b0] sm:$0xff] }
  0x62   : > { %2892 = vmatmul.mubr.msk.f32.gmra.mrb[40].mxu0 %vm281_vm1, %v188_v51  ;;  %v237_v51 = vld [vmem:[%s3346_s17 + $0x2d0] sm:$0xff] }
  0x63   : > { %2894 = vmatprep.mubr.msk.f32.mxu0 %vm281_vm1, %v189_v52  ;;  %v238_v52 = vld [vmem:[%s3346_s17 + $0x2d8] sm:$0xff] }
  0x66   : > { %2895 = vmatmul.mubr.msk.f32.gmra.mrb[42].mxu0 %vm281_vm1, %v190_v56  ;;  %v242_v56 = vld [vmem:[%s3346_s17 + $0x2f8] sm:$0xff] }
  0x67   : > { %2897 = vmatprep.mubr.msk.f32.mxu0 %vm281_vm1, %v191_v57  ;;  %v243_v57 = vld [vmem:[%s3346_s17 + $0x300] sm:$0xff] }
  0x6a   : > { %2898 = vmatmul.mubr.msk.f32.gmra.mrb[44].mxu0 %vm281_vm1, %v192_v60  ;;  %v246_v60 = vld [vmem:[%s3346_s17 + $0x318] sm:$0xff] }
  0x6b   : > { %2900 = vmatprep.mubr.msk.f32.mxu0 %vm281_vm1, %v193_v62  ;;  %v248_v62 = vld [vmem:[%s3346_s17 + $0x328] sm:$0xff] }
  0x6e   : > { %2901 = vmatmul.mubr.msk.f32.gmra.mrb[46].mxu0 %vm281_vm1, %v194_v2  ;;  %v252_v2 = vld [vmem:[%s3346_s17 + $0x348] sm:$0xff] }
  0x6f   : > { %2903 = vmatprep.mubr.msk.f32.mxu0 %vm281_vm1, %v195_v3  ;;  %v253_v3 = vld [vmem:[%s3346_s17 + $0x350] sm:$0xff] }
  0x72   : > { %2904 = vmatmul.mubr.msk.f32.gmra.mrb[48].mxu0 %vm281_vm1, %v196_v7 }
  0x73   : > { %2906 = vmatprep.mubr.msk.f32.mxu0 %vm281_vm1, %v197_v8  ;;  %v256_v8 = vld [vmem:[%s3346_s17 + $0x368] sm:$0xff] }
  0x76   : > { %2907 = vmatmul.mubr.msk.f32.gmra.mrb[50].mxu0 %vm281_vm1, %v198_v12  ;;  %v258_v12 = vld [vmem:[%s3346_s17 + $0x378] sm:$0xff] }
  0x77   : > { %2909 = vmatprep.mubr.msk.f32.mxu0 %vm281_vm1, %v199_v13  ;;  %v259_v13 = vld [vmem:[%s3346_s17 + $0x380] sm:$0xff] }
  0x7a   : > { %2910 = vmatmul.mubr.msk.f32.gmra.mrb[52].mxu0 %vm281_vm1, %v200_v14 }
  0x7b   : > { %2912 = vmatprep.mubr.msk.f32.mxu0 %vm281_vm1, %v201_v15 }
  0x7e   : > { %2913 = vmatmul.mubr.msk.f32.gmra.mrb[54].mxu0 %vm281_vm1, %v202_v16  ;;  %v260_v16 = vld [vmem:[%s3346_s17 + $0x388] sm:$0xff] }
  0x7f   : > { %2915 = vmatprep.mubr.msk.f32.mxu0 %vm281_vm1, %v203_v17  ;;  %v261_v17 = vld [vmem:[%s3346_s17 + $0x390] sm:$0xff] }
  0x82   : > { %2916 = vmatmul.mubr.msk.f32.gmra.mrb[56].mxu0 %vm281_vm1, %v204_v18  ;;  %v3639_v18 = vld [vmem:[%s4198_s1 + $0x4] ss:$0 sm:$0xff] }
  0x83   : > { %2918 = vmatprep.mubr.msk.f32.mxu0 %vm281_vm1, %v205_v19 }
  0x86   : > { %2919 = vmatmul.mubr.msk.f32.gmra.mrb[58].mxu0 %vm281_vm1, %v206_v20 }
  0x87   : > { %2921 = vmatprep.mubr.msk.f32.mxu0 %vm281_vm1, %v207_v21 }
  0x8a   : > { %2922 = vmatmul.mubr.msk.f32.gmra.mrb[60].mxu0 %vm281_vm1, %v208_v22  ;;  %v262_v22 = vld [vmem:[%s3346_s17 + $0x398] sm:$0xff] }
  0x8b   : > { %2924 = vmatprep.mubr.msk.f32.mxu0 %vm281_vm1, %v209_v23 }
  0x8e   : > { %2925 = vmatmul.mubr.msk.f32.gmra.mrb[62].mxu0 %vm281_vm1, %v210_v24  ;;  %v263_v24 = vld [vmem:[%s3346_s17 + $0x3a0] sm:$0xff] }
  0x8f   : > { %2927 = vmatprep.mubr.msk.f32.mxu0 %vm281_vm1, %v211_v25 }
  0x92   : > { %2928 = vmatmul.mubr.msk.f32.gmra.mrb[64].mxu0 %vm281_vm1, %v212_v26 }
  0x93   : > { %2930 = vmatprep.mubr.msk.f32.mxu0 %vm281_vm1, %v213_v27 }
  0x96   : > { %2931 = vmatmul.mubr.msk.f32.gmra.mrb[66].mxu0 %vm281_vm1, %v214_v28 }
  0x97   : > { %2933 = vmatprep.mubr.msk.f32.mxu0 %vm281_vm1, %v215_v29 }
  0x9a   : > { %2934 = vmatmul.mubr.msk.f32.gmra.mrb[68].mxu0 %vm281_vm1, %v216_v30 }
  0x9b   : > { %2936 = vmatprep.mubr.msk.f32.mxu0 %vm281_vm1, %v217_v31  ;;  %v264_v31 = vld [vmem:[%s3346_s17 + $0x3a8] sm:$0xff] }
  0x9e   : > { %2937 = vmatmul.mubr.msk.f32.gmra.mrb[70].mxu0 %vm281_vm1, %v218_v32  ;;  %v265_v32 = vld [vmem:[%s3346_s17 + $0x3b0] sm:$0xff] }
  0x9f   : > { %2939 = vmatprep.mubr.msk.f32.mxu0 %vm281_vm1, %v219_v33 }
  0xa2   : > { %2940 = vmatmul.mubr.msk.f32.gmra.mrb[72].mxu0 %vm281_vm1, %v220_v34 }
  0xa3   : > { %2942 = vmatprep.mubr.msk.f32.mxu0 %vm281_vm1, %v221_v35 }
  0xa6   : > { %2943 = vmatmul.mubr.msk.f32.gmra.mrb[74].mxu0 %vm281_vm1, %v222_v36 }
  0xa7   : > { %2945 = vmatprep.mubr.msk.f32.mxu0 %vm281_vm1, %v223_v37 }
  0xaa   : > { %2946 = vmatmul.mubr.msk.f32.gmra.mrb[76].mxu0 %vm281_vm1, %v224_v38 }
  0xab   : > { %2948 = vmatprep.mubr.msk.f32.mxu0 %vm281_vm1, %v225_v39  ;;  %v266_v39 = vld [vmem:[%s3346_s17 + $0x3b8] sm:$0xff] }
  0xae   : > { %2949 = vmatmul.mubr.msk.f32.gmra.mrb[78].mxu0 %vm281_vm1, %v226_v40  ;;  %v267_v40 = vld [vmem:[%s3346_s17 + $0x3c0] sm:$0xff] }
  0xaf   : > { %2951 = vmatprep.mubr.msk.f32.mxu0 %vm281_vm1, %v227_v41 }
  0xb2   : > { %2952 = vmatmul.mubr.msk.f32.gmra.mrb[80].mxu0 %vm281_vm1, %v228_v42 }
  0xb3   : > { %2954 = vmatprep.mubr.msk.f32.mxu0 %vm281_vm1, %v229_v43 }
  0xb6   : > { %2955 = vmatmul.mubr.msk.f32.gmra.mrb[82].mxu0 %vm281_vm1, %v230_v44 }
  0xb7   : > { %2957 = vmatprep.mubr.msk.f32.mxu0 %vm281_vm1, %v231_v45 }
  0xba   : > { %2958 = vmatmul.mubr.msk.f32.gmra.mrb[84].mxu0 %vm281_vm1, %v232_v46 }
  0xbb   : > { %2960 = vmatprep.mubr.msk.f32.mxu0 %vm281_vm1, %v233_v47  ;;  %v268_v47 = vld [vmem:[%s3346_s17 + $0x3c8] sm:$0xff] }
  0xbe   : > { %2961 = vmatmul.mubr.msk.f32.gmra.mrb[86].mxu0 %vm281_vm1, %v234_v48  ;;  %v269_v48 = vld [vmem:[%s3346_s17 + $0x3d0] sm:$0xff] }
  0xbf   : > { %2963 = vmatprep.mubr.msk.f32.mxu0 %vm281_vm1, %v235_v49 }
  0xc2   : > { %2964 = vmatmul.mubr.msk.f32.gmra.mrb[88].mxu0 %vm281_vm1, %v236_v50 }
  0xc3   : > { %2966 = vmatprep.mubr.msk.f32.mxu0 %vm281_vm1, %v237_v51 }
  0xc6   : > { %2967 = vmatmul.mubr.msk.f32.gmra.mrb[90].mxu0 %vm281_vm1, %v238_v52 }
  0xc7   : > { %2969 = vmatprep.mubr.msk.f32.mxu0 %vm281_vm1, %v239_v53 }
  0xca   : > { %2970 = vmatmul.mubr.msk.f32.gmra.mrb[92].mxu0 %vm281_vm1, %v240_v54 }
  0xcb   : > { %2972 = vmatprep.mubr.msk.f32.mxu0 %vm281_vm1, %v241_v55  ;;  %v270_v55 = vld [vmem:[%s3346_s17 + $0x3d8] sm:$0xff] }
  0xce   : > { %2973 = vmatmul.mubr.msk.f32.gmra.mrb[94].mxu0 %vm281_vm1, %v242_v56  ;;  %v271_v56 = vld [vmem:[%s3346_s17 + $0x3e0] sm:$0xff] }
  0xcf   : > { %2975 = vmatprep.mubr.msk.f32.mxu0 %vm281_vm1, %v243_v57 }
  0xd2   : > { %2976 = vmatmul.mubr.msk.f32.gmra.mrb[96].mxu0 %vm281_vm1, %v244_v58 }
  0xd3   : > { %2978 = vmatprep.mubr.msk.f32.mxu0 %vm281_vm1, %v245_v59 }
  0xd6   : > { %2979 = vmatmul.mubr.msk.f32.gmra.mrb[98].mxu0 %vm281_vm1, %v246_v60 }
  0xd7   : > { %2981 = vmatprep.mubr.msk.f32.mxu0 %vm281_vm1, %v247_v61 }
  0xda   : > { %2982 = vmatmul.mubr.msk.f32.gmra.mrb[100].mxu0 %vm281_vm1, %v248_v62 }
  0xdb   : > { %2984 = vmatprep.mubr.msk.f32.mxu0 %vm281_vm1, %v249_v63  ;;  %v272_v63 = vld [vmem:[%s3346_s17 + $0x3e8] sm:$0xff] }
  0xde   : > { %2985 = vmatmul.mubr.msk.f32.gmra.mrb[102].mxu0 %vm281_vm1, %v250_v0  ;;  %v273_v0 = vld [vmem:[%s3346_s17 + $0x3f0] sm:$0xff] }
  0xdf   : > { %2987 = vmatprep.mubr.msk.f32.mxu0 %vm281_vm1, %v251_v1 }
  0xe2   : > { %2988 = vmatmul.mubr.msk.f32.gmra.mrb[104].mxu0 %vm281_vm1, %v252_v2 }
  0xe3   : > { %2990 = vmatprep.mubr.msk.f32.mxu0 %vm281_vm1, %v253_v3 }
  0xe5   : > { %v3612_v6 = vpop.f32.mrb[0].mxu0 }
  0xe6   : > { %v3614_v7 = vpop.f32.mrb[1].mxu0  ;;  %2991 = vmatmul.mubr.msk.f32.gmra.mrb[106].mxu0 %vm281_vm1, %v254_v4 }
  0xe7   : > { %2993 = vmatprep.mubr.msk.f32.mxu0 %vm281_vm1, %v255_v5  ;;  %v737_v1 = vadd.f32 %v3639_v18, %v3614_v7 }
  0xe9   : > { %v3620_v10 = vpop.f32.mrb[2].mxu0 }
  0xea   : > { %v3622_v11 = vpop.f32.mrb[3].mxu0  ;;  %2994 = vmatmul.mubr.msk.f32.gmra.mrb[108].mxu0 %vm281_vm1, %v256_v8 }
  0xeb   : > { %2996 = vmatprep.mubr.msk.f32.mxu0 %vm281_vm1, %v257_v9  ;;  %v747_v7 = vadd.f32 %v3639_v18, %v3622_v11 }
  0xed   : > { %v3628_v14 = vpop.f32.mrb[4].mxu0 }
  0xee   : > { %v3630_v15 = vpop.f32.mrb[5].mxu0  ;;  %2997 = vmatmul.mubr.msk.f32.gmra.mrb[110].mxu0 %vm281_vm1, %v258_v12  ;;  %v274_v12 = vld [vmem:[%s3346_s17 + $0x3f8] sm:$0xff] }
  0xef   : > { %2999 = vmatprep.mubr.msk.f32.mxu0 %vm281_vm1, %v259_v13  ;;  %v742_v13 = vadd.f32 %v3612_v6, %v3639_v18  ;;  %v752_v6 = vadd.f32 %v3620_v10, %v3639_v18  ;;  %v757_v11 = vadd.f32 %v3639_v18, %v3630_v15  ;;  %v762_v10 = vadd.f32 %v3628_v14, %v3639_v18 }
  0xf1   : > { %v2842_v19 = vpop.f32.mrb[6].mxu0 }
  0xf2   : > { %v772_v20 = vadd.f32 %v2842_v19, %v3639_v18  ;;  %v766_v21 = vpop.f32.mrb[7].mxu0  ;;  %3000 = vmatmul.mubr.msk.f32.gmra.mrb[112].mxu0 %vm281_vm1, %v260_v16  ;;  %v1375_v16 = vmax.f32 %v737_v1, 0.0 }
  0xf3   : > { %3002 = vmatprep.mubr.msk.f32.mxu0 %vm281_vm1, %v261_v17  ;;  %v767_v23 = vadd.f32 %v3639_v18, %v766_v21 }
  0xf4   : > { %v1382_v27 = vmax.f32 %v772_v20, 0.0 }
  0xf5   : > { %v2845_v25 = vpop.f32.mrb[8].mxu0  ;;  %v1381_v26 = vmax.f32 %v767_v23, 0.0 }
  0xf6   : > { %v782_v28 = vadd.f32 %v2845_v25, %v3639_v18  ;;  %v776_v29 = vpop.f32.mrb[9].mxu0  ;;  %3003 = vmatmul.mubr.msk.f32.gmra.mrb[114].mxu0 %vm281_vm1, %v262_v22  ;;  %v1377_v25 = vmax.f32 %v747_v7, 0.0 }
  0xf7   : > { %v777_v30 = vadd.f32 %v3639_v18, %v776_v29  ;;  %3064 = vmatprep.mubr.f32.mxu1 %v1381_v26  ;;  %3005 = vmatprep.mubr.msk.f32.mxu0 %vm281_vm1, %v263_v24  ;;  %v1376_v24 = vmax.f32 %v742_v13, 0.0 }
  0xf8   : > { %3065 = vmatmul.mubr.f32.vlgmr.msra.gmra.mrb[0].mxu1 %v1382_v27  ;;  %v1384_v35 = vmax.f32 %v782_v28, 0.0 }
  0xf9   : > { %v1383_v33 = vmax.f32 %v777_v30, 0.0  ;;  %v2848_v34 = vpop.f32.mrb[10].mxu0 }
  0xfa   : > { %v792_v36 = vadd.f32 %v2848_v34, %v3639_v18  ;;  %v786_v37 = vpop.f32.mrb[11].mxu0  ;;  %3006 = vmatmul.mubr.msk.f32.gmra.mrb[116].mxu0 %vm281_vm1, %v264_v31 }
  0xfb   : > { %v787_v38 = vadd.f32 %v3639_v18, %v786_v37  ;;  %3067 = vmatprep.mubr.f32.mxu1 %v1383_v33  ;;  %3008 = vmatprep.mubr.msk.f32.mxu0 %vm281_vm1, %v265_v32  ;;  %v1378_v32 = vmax.f32 %v752_v6, 0.0  ;;  %v1379_v33 = vmax.f32 %v757_v11, 0.0 }
  0xfc   : > { %3068 = vmatmul.mubr.f32.gmra.mrb[2].mxu1 %v1384_v35  ;;  %v1386_v43 = vmax.f32 %v792_v36, 0.0 }
  0xfd   : > { %v1385_v41 = vmax.f32 %v787_v38, 0.0  ;;  %v2851_v42 = vpop.f32.mrb[12].mxu0 }
  0xfe   : > { %v802_v44 = vadd.f32 %v2851_v42, %v3639_v18  ;;  %v796_v45 = vpop.f32.mrb[13].mxu0  ;;  %3009 = vmatmul.mubr.msk.f32.gmra.mrb[118].mxu0 %vm281_vm1, %v266_v39  ;;  %v1380_v39 = vmax.f32 %v762_v10, 0.0 }
  0xff   : > { %v797_v46 = vadd.f32 %v3639_v18, %v796_v45  ;;  %3070 = vmatprep.mubr.f32.mxu1 %v1385_v41  ;;  %3011 = vmatprep.mubr.msk.f32.mxu0 %vm281_vm1, %v267_v40 }
 0x100   : > { %3071 = vmatmul.mubr.f32.gmra.mrb[4].mxu1 %v1386_v43  ;;  %v1388_v51 = vmax.f32 %v802_v44, 0.0 }
 0x101   : > { %v1387_v49 = vmax.f32 %v797_v46, 0.0  ;;  %v2854_v50 = vpop.f32.mrb[14].mxu0 }
 0x102   : > { %v812_v52 = vadd.f32 %v2854_v50, %v3639_v18  ;;  %v806_v53 = vpop.f32.mrb[15].mxu0  ;;  %3012 = vmatmul.mubr.msk.f32.gmra.mrb[120].mxu0 %vm281_vm1, %v268_v47 }
 0x103   : > { %v807_v54 = vadd.f32 %v3639_v18, %v806_v53  ;;  %3073 = vmatprep.mubr.f32.mxu1 %v1387_v49  ;;  %3014 = vmatprep.mubr.msk.f32.mxu0 %vm281_vm1, %v269_v48 }
 0x104   : > { %3074 = vmatmul.mubr.f32.gmra.mrb[6].mxu1 %v1388_v51  ;;  %v1390_v59 = vmax.f32 %v812_v52, 0.0 }
 0x105   : > { %v1389_v57 = vmax.f32 %v807_v54, 0.0  ;;  %v2857_v58 = vpop.f32.mrb[16].mxu0 }
 0x106   : > { %v822_v60 = vadd.f32 %v2857_v58, %v3639_v18  ;;  %v816_v61 = vpop.f32.mrb[17].mxu0  ;;  %3015 = vmatmul.mubr.msk.f32.gmra.mrb[122].mxu0 %vm281_vm1, %v270_v55 }
 0x107   : > { %v817_v62 = vadd.f32 %v3639_v18, %v816_v61  ;;  %3076 = vmatprep.mubr.f32.mxu1 %v1389_v57  ;;  %3017 = vmatprep.mubr.msk.f32.mxu0 %vm281_vm1, %v271_v56 }
 0x108   : > { %3077 = vmatmul.mubr.f32.gmra.mrb[8].mxu1 %v1390_v59  ;;  %v1392_v4 = vmax.f32 %v822_v60, 0.0 }
 0x109   : > { %v1391_v2 = vmax.f32 %v817_v62, 0.0  ;;  %v2860_v3 = vpop.f32.mrb[18].mxu0 }
 0x10a   : > { %v832_v5 = vadd.f32 %v2860_v3, %v3639_v18  ;;  %v826_v8 = vpop.f32.mrb[19].mxu0  ;;  %3018 = vmatmul.mubr.msk.f32.gmra.mrb[124].mxu0 %vm281_vm1, %v272_v63 }
 0x10b   : > { %v827_v9 = vadd.f32 %v3639_v18, %v826_v8  ;;  %3079 = vmatprep.mubr.f32.mxu1 %v1391_v2  ;;  %3020 = vmatprep.mubr.msk.f32.mxu0 %vm281_vm1, %v273_v0 }
 0x10c   : > { %3080 = vmatmul.mubr.f32.gmra.mrb[10].mxu1 %v1392_v4  ;;  %v1394_v20 = vmax.f32 %v832_v5, 0.0 }
 0x10d   : > { %v1393_v17 = vmax.f32 %v827_v9, 0.0  ;;  %v2863_v19 = vpop.f32.mrb[20].mxu0 }
 0x10e   : > { %v842_v21 = vadd.f32 %v2863_v19, %v3639_v18  ;;  %v836_v22 = vpop.f32.mrb[21].mxu0  ;;  %3021 = vmatmul.mubr.msk.f32.gmra.mrb[126].mxu0 %vm281_vm1, %v274_v12 }
 0x10f   : > { %v837_v23 = vadd.f32 %v3639_v18, %v836_v22  ;;  %3055 = vmatprep.mubr.f32.mxu0 %v1375_v16  ;;  %3082 = vmatprep.mubr.f32.mxu1 %v1393_v17 }
 0x110   : > { %3083 = vmatmul.mubr.f32.gmra.mrb[12].mxu1 %v1394_v20  ;;  %v1396_v28 = vmax.f32 %v842_v21, 0.0 }
 0x111   : > { %v1395_v26 = vmax.f32 %v837_v23, 0.0  ;;  %v2866_v27 = vpop.f32.mrb[22].mxu0 }
 0x112   : > { %v852_v29 = vadd.f32 %v2866_v27, %v3639_v18  ;;  %v846_v30 = vpop.f32.mrb[23].mxu0  ;;  %3056 = vmatmul.mubr.f32.vlgmr.msra.gmra.mrb[128].mxu0 %v1376_v24 }
 0x113   : > { %v847_v31 = vadd.f32 %v3639_v18, %v846_v30  ;;  %3058 = vmatprep.mubr.f32.mxu0 %v1377_v25  ;;  %3085 = vmatprep.mubr.f32.mxu1 %v1395_v26 }
 0x114   : > { %3086 = vmatmul.mubr.f32.gmra.mrb[14].mxu1 %v1396_v28  ;;  %v1398_v15 = vmax.f32 %v852_v29, 0.0 }
 0x115   : > { %v1397_v34 = vmax.f32 %v847_v31, 0.0  ;;  %v2869_v35 = vpop.f32.mrb[24].mxu0 }
 0x116   : > { %v862_v36 = vadd.f32 %v2869_v35, %v3639_v18  ;;  %v856_v37 = vpop.f32.mrb[25].mxu0  ;;  %3059 = vmatmul.mubr.f32.gmra.mrb[130].mxu0 %v1378_v32 }
 0x117   : > { %v857_v38 = vadd.f32 %v3639_v18, %v856_v37  ;;  %3061 = vmatprep.mubr.f32.mxu0 %v1379_v33  ;;  %3088 = vmatprep.mubr.f32.mxu1 %v1397_v34 }
 0x118   : > { %3089 = vmatmul.mubr.f32.gmra.mrb[16].mxu1 %v1398_v15  ;;  %v1400_v42 = vmax.f32 %v862_v36, 0.0 }
 0x119   : > { %v1399_v40 = vmax.f32 %v857_v38, 0.0  ;;  %v2872_v41 = vpop.f32.mrb[26].mxu0 }
 0x11a   : > { %v872_v14 = vadd.f32 %v2872_v41, %v3639_v18  ;;  %v866_v43 = vpop.f32.mrb[27].mxu0  ;;  %3062 = vmatmul.mubr.f32.gmra.mrb[132].mxu0 %v1380_v39 }
 0x11b   : > { %v867_v44 = vadd.f32 %v3639_v18, %v866_v43  ;;  %3091 = vmatprep.mubr.f32.mxu1 %v1399_v40 }
 0x11c   : > { %3092 = vmatmul.mubr.f32.gmra.mrb[18].mxu1 %v1400_v42  ;;  %v1402_v47 = vmax.f32 %v872_v14, 0.0 }
 0x11d   : > { %v1401_v45 = vmax.f32 %v867_v44, 0.0  ;;  %v2875_v46 = vpop.f32.mrb[28].mxu0 }
 0x11e   : > { %v882_v48 = vadd.f32 %v2875_v46, %v3639_v18  ;;  %v876_v49 = vpop.f32.mrb[29].mxu0 }
 0x11f   : > { %v877_v50 = vadd.f32 %v3639_v18, %v876_v49  ;;  %3094 = vmatprep.mubr.f32.mxu1 %v1401_v45 }
 0x120   : > { %3095 = vmatmul.mubr.f32.gmra.mrb[20].mxu1 %v1402_v47  ;;  %v1404_v53 = vmax.f32 %v882_v48, 0.0 }
 0x121   : > { %v1403_v51 = vmax.f32 %v877_v50, 0.0  ;;  %v2878_v52 = vpop.f32.mrb[30].mxu0 }
 0x122   : > { %v892_v54 = vadd.f32 %v2878_v52, %v3639_v18  ;;  %v886_v55 = vpop.f32.mrb[31].mxu0 }
 0x123   : > { %v887_v56 = vadd.f32 %v3639_v18, %v886_v55  ;;  %3097 = vmatprep.mubr.f32.mxu1 %v1403_v51 }
 0x124   : > { %3098 = vmatmul.mubr.f32.gmra.mrb[22].mxu1 %v1404_v53  ;;  %v1406_v59 = vmax.f32 %v892_v54, 0.0 }
 0x125   : > { %v1405_v57 = vmax.f32 %v887_v56, 0.0  ;;  %v2881_v58 = vpop.f32.mrb[32].mxu0 }
 0x126   : > { %v902_v60 = vadd.f32 %v2881_v58, %v3639_v18  ;;  %v896_v61 = vpop.f32.mrb[33].mxu0 }
 0x127   : > { %v897_v62 = vadd.f32 %v3639_v18, %v896_v61  ;;  %3100 = vmatprep.mubr.f32.mxu1 %v1405_v57 }
 0x128   : > { %3101 = vmatmul.mubr.f32.gmra.mrb[24].mxu1 %v1406_v59  ;;  %v1408_v1 = vmax.f32 %v902_v60, 0.0 }
 0x129   : > { %v1407_v63 = vmax.f32 %v897_v62, 0.0  ;;  %v2884_v0 = vpop.f32.mrb[34].mxu0 }
 0x12a   : > { %v912_v2 = vadd.f32 %v2884_v0, %v3639_v18  ;;  %v906_v3 = vpop.f32.mrb[35].mxu0 }
 0x12b   : > { %v907_v4 = vadd.f32 %v3639_v18, %v906_v3  ;;  %3103 = vmatprep.mubr.f32.mxu1 %v1407_v63 }
 0x12c   : > { %3104 = vmatmul.mubr.f32.gmra.mrb[26].mxu1 %v1408_v1  ;;  %v1410_v9 = vmax.f32 %v912_v2, 0.0 }
 0x12d   : > { %v1409_v5 = vmax.f32 %v907_v4, 0.0  ;;  %v2887_v8 = vpop.f32.mrb[36].mxu0 }
 0x12e   : > { %v922_v12 = vadd.f32 %v2887_v8, %v3639_v18  ;;  %v916_v13 = vpop.f32.mrb[37].mxu0 }
 0x12f   : > { %v917_v16 = vadd.f32 %v3639_v18, %v916_v13  ;;  %3106 = vmatprep.mubr.f32.mxu1 %v1409_v5 }
 0x130   : > { %3107 = vmatmul.mubr.f32.gmra.mrb[28].mxu1 %v1410_v9  ;;  %v1412_v19 = vmax.f32 %v922_v12, 0.0 }
 0x131   : > { %v1411_v7 = vmax.f32 %v917_v16, 0.0  ;;  %v2890_v17 = vpop.f32.mrb[38].mxu0 }
 0x132   : > { %v932_v20 = vadd.f32 %v2890_v17, %v3639_v18  ;;  %v926_v21 = vpop.f32.mrb[39].mxu0 }
 0x133   : > { %v927_v22 = vadd.f32 %v3639_v18, %v926_v21  ;;  %3109 = vmatprep.mubr.f32.mxu1 %v1411_v7 }
 0x134   : > { %3110 = vmatmul.mubr.f32.gmra.mrb[30].mxu1 %v1412_v19  ;;  %v1414_v6 = vmax.f32 %v932_v20, 0.0 }
 0x135   : > { %v1413_v23 = vmax.f32 %v927_v22, 0.0  ;;  %v2893_v24 = vpop.f32.mrb[40].mxu0 }
 0x136   : > { %v942_v25 = vadd.f32 %v2893_v24, %v3639_v18  ;;  %v936_v11 = vpop.f32.mrb[41].mxu0 }
 0x137   : > { %v937_v26 = vadd.f32 %v3639_v18, %v936_v11  ;;  %3112 = vmatprep.mubr.f32.mxu1 %v1413_v23 }
 0x138   : > { %3113 = vmatmul.mubr.f32.gmra.mrb[32].mxu1 %v1414_v6  ;;  %v1416_v29 = vmax.f32 %v942_v25, 0.0 }
 0x139   : > { %v1415_v27 = vmax.f32 %v937_v26, 0.0  ;;  %v2896_v28 = vpop.f32.mrb[42].mxu0 }
 0x13a   : > { %v952_v30 = vadd.f32 %v2896_v28, %v3639_v18  ;;  %v946_v31 = vpop.f32.mrb[43].mxu0 }
 0x13b   : > { %v947_v32 = vadd.f32 %v3639_v18, %v946_v31  ;;  %3115 = vmatprep.mubr.f32.mxu1 %v1415_v27 }
 0x13c   : > { %3116 = vmatmul.mubr.f32.gmra.mrb[34].mxu1 %v1416_v29  ;;  %v1418_v34 = vmax.f32 %v952_v30, 0.0 }
 0x13d   : > { %v1417_v10 = vmax.f32 %v947_v32, 0.0  ;;  %v2899_v33 = vpop.f32.mrb[44].mxu0 }
 0x13e   : > { %v962_v35 = vadd.f32 %v2899_v33, %v3639_v18  ;;  %v956_v15 = vpop.f32.mrb[45].mxu0 }
 0x13f   : > { %v957_v36 = vadd.f32 %v3639_v18, %v956_v15  ;;  %3118 = vmatprep.mubr.f32.mxu1 %v1417_v10 }
 0x140   : > { %3119 = vmatmul.mubr.f32.gmra.mrb[36].mxu1 %v1418_v34  ;;  %v1420_v39 = vmax.f32 %v962_v35, 0.0 }
 0x141   : > { %v1419_v37 = vmax.f32 %v957_v36, 0.0  ;;  %v2902_v38 = vpop.f32.mrb[46].mxu0 }
 0x142   : > { %v972_v40 = vadd.f32 %v2902_v38, %v3639_v18  ;;  %v966_v41 = vpop.f32.mrb[47].mxu0 }
 0x143   : > { %v967_v42 = vadd.f32 %v3639_v18, %v966_v41  ;;  %3121 = vmatprep.mubr.f32.mxu1 %v1419_v37 }
 0x144   : > { %3122 = vmatmul.mubr.f32.gmra.mrb[38].mxu1 %v1420_v39  ;;  %v1422_v44 = vmax.f32 %v972_v40, 0.0 }
 0x145   : > { %v1421_v14 = vmax.f32 %v967_v42, 0.0  ;;  %v2905_v43 = vpop.f32.mrb[48].mxu0 }
 0x146   : > { %v982_v45 = vadd.f32 %v2905_v43, %v3639_v18  ;;  %v976_v46 = vpop.f32.mrb[49].mxu0 }
 0x147   : > { %v977_v47 = vadd.f32 %v3639_v18, %v976_v46  ;;  %3124 = vmatprep.mubr.f32.mxu1 %v1421_v14 }
 0x148   : > { %3125 = vmatmul.mubr.f32.gmra.mrb[40].mxu1 %v1422_v44  ;;  %v1424_v50 = vmax.f32 %v982_v45, 0.0 }
 0x149   : > { %v1423_v48 = vmax.f32 %v977_v47, 0.0  ;;  %v2908_v49 = vpop.f32.mrb[50].mxu0 }
 0x14a   : > { %v992_v51 = vadd.f32 %v2908_v49, %v3639_v18  ;;  %v986_v52 = vpop.f32.mrb[51].mxu0 }
 0x14b   : > { %v987_v53 = vadd.f32 %v3639_v18, %v986_v52  ;;  %3127 = vmatprep.mubr.f32.mxu1 %v1423_v48 }
 0x14c   : > { %3128 = vmatmul.mubr.f32.gmra.mrb[42].mxu1 %v1424_v50  ;;  %v1426_v56 = vmax.f32 %v992_v51, 0.0 }
 0x14d   : > { %v1425_v54 = vmax.f32 %v987_v53, 0.0  ;;  %v2911_v55 = vpop.f32.mrb[52].mxu0 }
 0x14e   : > { %v1002_v57 = vadd.f32 %v2911_v55, %v3639_v18  ;;  %v996_v58 = vpop.f32.mrb[53].mxu0 }
 0x14f   : > { %v997_v59 = vadd.f32 %v3639_v18, %v996_v58  ;;  %3130 = vmatprep.mubr.f32.mxu1 %v1425_v54 }
 0x150   : > { %3131 = vmatmul.mubr.f32.gmra.mrb[44].mxu1 %v1426_v56  ;;  %v1428_v62 = vmax.f32 %v1002_v57, 0.0 }
 0x151   : > { %v1427_v60 = vmax.f32 %v997_v59, 0.0  ;;  %v2914_v61 = vpop.f32.mrb[54].mxu0 }
 0x152   : > { %v1012_v63 = vadd.f32 %v2914_v61, %v3639_v18  ;;  %v1006_v0 = vpop.f32.mrb[55].mxu0 }
 0x153   : > { %v1007_v1 = vadd.f32 %v3639_v18, %v1006_v0  ;;  %3133 = vmatprep.mubr.f32.mxu1 %v1427_v60 }
 0x154   : > { %3134 = vmatmul.mubr.f32.gmra.mrb[46].mxu1 %v1428_v62  ;;  %v1430_v4 = vmax.f32 %v1012_v63, 0.0 }
 0x155   : > { %v1429_v2 = vmax.f32 %v1007_v1, 0.0  ;;  %v2917_v3 = vpop.f32.mrb[56].mxu0 }
 0x156   : > { %v1022_v5 = vadd.f32 %v2917_v3, %v3639_v18  ;;  %v1016_v8 = vpop.f32.mrb[57].mxu0 }
 0x157   : > { %v1017_v9 = vadd.f32 %v3639_v18, %v1016_v8  ;;  %3136 = vmatprep.mubr.f32.mxu1 %v1429_v2 }
 0x158   : > { %3137 = vmatmul.mubr.f32.gmra.mrb[48].mxu1 %v1430_v4  ;;  %v1432_v16 = vmax.f32 %v1022_v5, 0.0 }
 0x159   : > { %v1431_v12 = vmax.f32 %v1017_v9, 0.0  ;;  %v2920_v13 = vpop.f32.mrb[58].mxu0 }
 0x15a   : > { %v1032_v7 = vadd.f32 %v2920_v13, %v3639_v18  ;;  %v1026_v17 = vpop.f32.mrb[59].mxu0 }
 0x15b   : > { %v1027_v19 = vadd.f32 %v3639_v18, %v1026_v17  ;;  %3139 = vmatprep.mubr.f32.mxu1 %v1431_v12 }
 0x15c   : > { %3140 = vmatmul.mubr.f32.gmra.mrb[50].mxu1 %v1432_v16  ;;  %v1434_v22 = vmax.f32 %v1032_v7, 0.0 }
 0x15d   : > { %v1433_v20 = vmax.f32 %v1027_v19, 0.0  ;;  %v2923_v21 = vpop.f32.mrb[60].mxu0 }
 0x15e   : > { %v1042_v23 = vadd.f32 %v2923_v21, %v3639_v18  ;;  %v1036_v24 = vpop.f32.mrb[61].mxu0 }
 0x15f   : > { %v1037_v6 = vadd.f32 %v3639_v18, %v1036_v24  ;;  %3142 = vmatprep.mubr.f32.mxu1 %v1433_v20 }
 0x160   : > { %3143 = vmatmul.mubr.f32.gmra.mrb[52].mxu1 %v1434_v22  ;;  %v1436_v26 = vmax.f32 %v1042_v23, 0.0 }
 0x161   : > { %v1435_v25 = vmax.f32 %v1037_v6, 0.0  ;;  %v2926_v11 = vpop.f32.mrb[62].mxu0 }
 0x162   : > { %v1052_v27 = vadd.f32 %v2926_v11, %v3639_v18  ;;  %v1046_v28 = vpop.f32.mrb[63].mxu0 }
 0x163   : > { %v1047_v29 = vadd.f32 %v3639_v18, %v1046_v28  ;;  %3145 = vmatprep.mubr.f32.mxu1 %v1435_v25 }
 0x164   : > { %3146 = vmatmul.mubr.f32.gmra.mrb[54].mxu1 %v1436_v26  ;;  %v1438_v32 = vmax.f32 %v1052_v27, 0.0 }
 0x165   : > { %v1437_v30 = vmax.f32 %v1047_v29, 0.0  ;;  %v2929_v31 = vpop.f32.mrb[64].mxu0 }
 0x166   : > { %v1062_v10 = vadd.f32 %v2929_v31, %v3639_v18  ;;  %v1056_v33 = vpop.f32.mrb[65].mxu0 }
 0x167   : > { %v1057_v34 = vadd.f32 %v3639_v18, %v1056_v33  ;;  %3148 = vmatprep.mubr.f32.mxu1 %v1437_v30 }
 0x168   : > { %3149 = vmatmul.mubr.f32.gmra.mrb[56].mxu1 %v1438_v32  ;;  %v1440_v36 = vmax.f32 %v1062_v10, 0.0 }
 0x169   : > { %v1439_v35 = vmax.f32 %v1057_v34, 0.0  ;;  %v2932_v15 = vpop.f32.mrb[66].mxu0 }
 0x16a   : > { %v1072_v37 = vadd.f32 %v2932_v15, %v3639_v18  ;;  %v1066_v38 = vpop.f32.mrb[67].mxu0 }
 0x16b   : > { %v1067_v39 = vadd.f32 %v3639_v18, %v1066_v38  ;;  %3151 = vmatprep.mubr.f32.mxu1 %v1439_v35 }
 0x16c   : > { %3152 = vmatmul.mubr.f32.gmra.mrb[58].mxu1 %v1440_v36  ;;  %v1442_v42 = vmax.f32 %v1072_v37, 0.0 }
 0x16d   : > { %v1441_v40 = vmax.f32 %v1067_v39, 0.0  ;;  %v2935_v41 = vpop.f32.mrb[68].mxu0 }
 0x16e   : > { %v1082_v14 = vadd.f32 %v2935_v41, %v3639_v18  ;;  %v1076_v43 = vpop.f32.mrb[69].mxu0 }
 0x16f   : > { %v1077_v44 = vadd.f32 %v3639_v18, %v1076_v43  ;;  %3154 = vmatprep.mubr.f32.mxu1 %v1441_v40 }
 0x170   : > { %3155 = vmatmul.mubr.f32.gmra.mrb[60].mxu1 %v1442_v42  ;;  %v1444_v47 = vmax.f32 %v1082_v14, 0.0 }
 0x171   : > { %v1443_v45 = vmax.f32 %v1077_v44, 0.0  ;;  %v2938_v46 = vpop.f32.mrb[70].mxu0 }
 0x172   : > { %v1092_v48 = vadd.f32 %v2938_v46, %v3639_v18  ;;  %v1086_v49 = vpop.f32.mrb[71].mxu0 }
 0x173   : > { %v1087_v50 = vadd.f32 %v3639_v18, %v1086_v49  ;;  %3157 = vmatprep.mubr.f32.mxu1 %v1443_v45 }
 0x174   : > { %3158 = vmatmul.mubr.f32.gmra.mrb[62].mxu1 %v1444_v47  ;;  %v1446_v53 = vmax.f32 %v1092_v48, 0.0 }
 0x175   : > { %v1445_v51 = vmax.f32 %v1087_v50, 0.0  ;;  %v2941_v52 = vpop.f32.mrb[72].mxu0 }
 0x176   : > { %v1102_v54 = vadd.f32 %v2941_v52, %v3639_v18  ;;  %v1096_v55 = vpop.f32.mrb[73].mxu0 }
 0x177   : > { %v1097_v56 = vadd.f32 %v3639_v18, %v1096_v55  ;;  %3160 = vmatprep.mubr.f32.mxu1 %v1445_v51 }
 0x178   : > { %3161 = vmatmul.mubr.f32.gmra.mrb[64].mxu1 %v1446_v53  ;;  %v1448_v59 = vmax.f32 %v1102_v54, 0.0 }
 0x179   : > { %v1447_v57 = vmax.f32 %v1097_v56, 0.0  ;;  %v2944_v58 = vpop.f32.mrb[74].mxu0 }
 0x17a   : > { %v1112_v60 = vadd.f32 %v2944_v58, %v3639_v18  ;;  %v1106_v61 = vpop.f32.mrb[75].mxu0 }
 0x17b   : > { %v1107_v62 = vadd.f32 %v3639_v18, %v1106_v61  ;;  %3163 = vmatprep.mubr.f32.mxu1 %v1447_v57 }
 0x17c   : > { %3164 = vmatmul.mubr.f32.gmra.mrb[66].mxu1 %v1448_v59  ;;  %v1450_v1 = vmax.f32 %v1112_v60, 0.0 }
 0x17d   : > { %v1449_v63 = vmax.f32 %v1107_v62, 0.0  ;;  %v2947_v0 = vpop.f32.mrb[76].mxu0 }
 0x17e   : > { %v1122_v2 = vadd.f32 %v2947_v0, %v3639_v18  ;;  %v1116_v3 = vpop.f32.mrb[77].mxu0 }
 0x17f   : > { %v1117_v4 = vadd.f32 %v3639_v18, %v1116_v3  ;;  %3166 = vmatprep.mubr.f32.mxu1 %v1449_v63 }
 0x180   : > { %3167 = vmatmul.mubr.f32.gmra.mrb[68].mxu1 %v1450_v1  ;;  %v1452_v9 = vmax.f32 %v1122_v2, 0.0 }
 0x181   : > { %v1451_v5 = vmax.f32 %v1117_v4, 0.0  ;;  %v2950_v8 = vpop.f32.mrb[78].mxu0 }
 0x182   : > { %v1132_v12 = vadd.f32 %v2950_v8, %v3639_v18  ;;  %v1126_v13 = vpop.f32.mrb[79].mxu0 }
 0x183   : > { %v1127_v16 = vadd.f32 %v3639_v18, %v1126_v13  ;;  %3169 = vmatprep.mubr.f32.mxu1 %v1451_v5 }
 0x184   : > { %3170 = vmatmul.mubr.f32.gmra.mrb[70].mxu1 %v1452_v9  ;;  %v1454_v19 = vmax.f32 %v1132_v12, 0.0 }
 0x185   : > { %v1453_v7 = vmax.f32 %v1127_v16, 0.0  ;;  %v2953_v17 = vpop.f32.mrb[80].mxu0 }
 0x186   : > { %v1142_v20 = vadd.f32 %v2953_v17, %v3639_v18  ;;  %v1136_v21 = vpop.f32.mrb[81].mxu0 }
 0x187   : > { %v1137_v22 = vadd.f32 %v3639_v18, %v1136_v21  ;;  %3172 = vmatprep.mubr.f32.mxu1 %v1453_v7 }
 0x188   : > { %3173 = vmatmul.mubr.f32.gmra.mrb[72].mxu1 %v1454_v19  ;;  %v1456_v6 = vmax.f32 %v1142_v20, 0.0 }
 0x189   : > { %v1455_v23 = vmax.f32 %v1137_v22, 0.0  ;;  %v2956_v24 = vpop.f32.mrb[82].mxu0 }
 0x18a   : > { %v1152_v25 = vadd.f32 %v2956_v24, %v3639_v18  ;;  %v1146_v11 = vpop.f32.mrb[83].mxu0 }
 0x18b   : > { %v1147_v26 = vadd.f32 %v3639_v18, %v1146_v11  ;;  %3175 = vmatprep.mubr.f32.mxu1 %v1455_v23 }
 0x18c   : > { %3176 = vmatmul.mubr.f32.gmra.mrb[74].mxu1 %v1456_v6  ;;  %v1458_v29 = vmax.f32 %v1152_v25, 0.0 }
 0x18d   : > { %v1457_v27 = vmax.f32 %v1147_v26, 0.0  ;;  %v2959_v28 = vpop.f32.mrb[84].mxu0 }
 0x18e   : > { %v1162_v30 = vadd.f32 %v2959_v28, %v3639_v18  ;;  %v1156_v31 = vpop.f32.mrb[85].mxu0 }
 0x18f   : > { %v1157_v32 = vadd.f32 %v3639_v18, %v1156_v31  ;;  %3178 = vmatprep.mubr.f32.mxu1 %v1457_v27 }
 0x190   : > { %3179 = vmatmul.mubr.f32.gmra.mrb[76].mxu1 %v1458_v29  ;;  %v1460_v34 = vmax.f32 %v1162_v30, 0.0 }
 0x191   : > { %v1459_v10 = vmax.f32 %v1157_v32, 0.0  ;;  %v2962_v33 = vpop.f32.mrb[86].mxu0 }
 0x192   : > { %v1172_v35 = vadd.f32 %v2962_v33, %v3639_v18  ;;  %v1166_v15 = vpop.f32.mrb[87].mxu0 }
 0x193   : > { %v1167_v36 = vadd.f32 %v3639_v18, %v1166_v15  ;;  %3181 = vmatprep.mubr.f32.mxu1 %v1459_v10 }
 0x194   : > { %3182 = vmatmul.mubr.f32.gmra.mrb[78].mxu1 %v1460_v34  ;;  %v1462_v39 = vmax.f32 %v1172_v35, 0.0 }
 0x195   : > { %v1461_v37 = vmax.f32 %v1167_v36, 0.0  ;;  %v2965_v38 = vpop.f32.mrb[88].mxu0 }
 0x196   : > { %v1182_v40 = vadd.f32 %v2965_v38, %v3639_v18  ;;  %v1176_v41 = vpop.f32.mrb[89].mxu0 }
 0x197   : > { %v1177_v42 = vadd.f32 %v3639_v18, %v1176_v41  ;;  %3184 = vmatprep.mubr.f32.mxu1 %v1461_v37 }
 0x198   : > { %3185 = vmatmul.mubr.f32.gmra.mrb[80].mxu1 %v1462_v39  ;;  %v1464_v44 = vmax.f32 %v1182_v40, 0.0 }
 0x199   : > { %v1463_v14 = vmax.f32 %v1177_v42, 0.0  ;;  %v2968_v43 = vpop.f32.mrb[90].mxu0 }
 0x19a   : > { %v1192_v45 = vadd.f32 %v2968_v43, %v3639_v18  ;;  %v1186_v46 = vpop.f32.mrb[91].mxu0 }
 0x19b   : > { %v1187_v47 = vadd.f32 %v3639_v18, %v1186_v46  ;;  %3187 = vmatprep.mubr.f32.mxu1 %v1463_v14 }
 0x19c   : > { %3188 = vmatmul.mubr.f32.gmra.mrb[82].mxu1 %v1464_v44  ;;  %v1466_v50 = vmax.f32 %v1192_v45, 0.0 }
 0x19d   : > { %v1465_v48 = vmax.f32 %v1187_v47, 0.0  ;;  %v2971_v49 = vpop.f32.mrb[92].mxu0 }
 0x19e   : > { %v1202_v51 = vadd.f32 %v2971_v49, %v3639_v18  ;;  %v1196_v52 = vpop.f32.mrb[93].mxu0 }
 0x19f   : > { %v1197_v53 = vadd.f32 %v3639_v18, %v1196_v52  ;;  %3190 = vmatprep.mubr.f32.mxu1 %v1465_v48 }
 0x1a0   : > { %3191 = vmatmul.mubr.f32.gmra.mrb[84].mxu1 %v1466_v50  ;;  %v1468_v56 = vmax.f32 %v1202_v51, 0.0 }
 0x1a1   : > { %v1467_v54 = vmax.f32 %v1197_v53, 0.0  ;;  %v2974_v55 = vpop.f32.mrb[94].mxu0  ;;  %v3792_v53 = vld [vmem:[%s4198_s1 + $0x5] ss:$0 sm:$0xff] }
 0x1a2   : > { %v1212_v57 = vadd.f32 %v2974_v55, %v3639_v18  ;;  %v1206_v58 = vpop.f32.mrb[95].mxu0 }
 0x1a3   : > { %v1207_v59 = vadd.f32 %v3639_v18, %v1206_v58  ;;  %3193 = vmatprep.mubr.f32.mxu1 %v1467_v54 }
 0x1a4   : > { %3194 = vmatmul.mubr.f32.gmra.mrb[86].mxu1 %v1468_v56  ;;  %v1470_v62 = vmax.f32 %v1212_v57, 0.0 }
 0x1a5   : > { %v1469_v60 = vmax.f32 %v1207_v59, 0.0  ;;  %v2977_v61 = vpop.f32.mrb[96].mxu0 }
 0x1a6   : > { %v1222_v63 = vadd.f32 %v2977_v61, %v3639_v18  ;;  %v1216_v0 = vpop.f32.mrb[97].mxu0 }
 0x1a7   : > { %v1217_v1 = vadd.f32 %v3639_v18, %v1216_v0  ;;  %3196 = vmatprep.mubr.f32.mxu1 %v1469_v60 }
 0x1a8   : > { %3197 = vmatmul.mubr.f32.gmra.mrb[88].mxu1 %v1470_v62  ;;  %v1472_v4 = vmax.f32 %v1222_v63, 0.0 }
 0x1a9   : > { %v1471_v2 = vmax.f32 %v1217_v1, 0.0  ;;  %v2980_v3 = vpop.f32.mrb[98].mxu0 }
 0x1aa   : > { %v1232_v5 = vadd.f32 %v2980_v3, %v3639_v18  ;;  %v1226_v8 = vpop.f32.mrb[99].mxu0 }
 0x1ab   : > { %v1227_v9 = vadd.f32 %v3639_v18, %v1226_v8  ;;  %3199 = vmatprep.mubr.f32.mxu1 %v1471_v2 }
 0x1ac   : > { %3200 = vmatmul.mubr.f32.gmra.mrb[90].mxu1 %v1472_v4  ;;  %v1474_v16 = vmax.f32 %v1232_v5, 0.0 }
 0x1ad   : > { %v1473_v12 = vmax.f32 %v1227_v9, 0.0  ;;  %v2983_v13 = vpop.f32.mrb[100].mxu0 }
 0x1ae   : > { %v1242_v7 = vadd.f32 %v2983_v13, %v3639_v18  ;;  %v1236_v17 = vpop.f32.mrb[101].mxu0 }
 0x1af   : > { %v1237_v19 = vadd.f32 %v3639_v18, %v1236_v17  ;;  %3202 = vmatprep.mubr.f32.mxu1 %v1473_v12 }
 0x1b0   : > { %3203 = vmatmul.mubr.f32.gmra.mrb[92].mxu1 %v1474_v16  ;;  %v1476_v22 = vmax.f32 %v1242_v7, 0.0 }
 0x1b1   : > { %v1475_v20 = vmax.f32 %v1237_v19, 0.0  ;;  %v2986_v21 = vpop.f32.mrb[102].mxu0 }
 0x1b2   : > { %v1252_v23 = vadd.f32 %v2986_v21, %v3639_v18  ;;  %v1246_v24 = vpop.f32.mrb[103].mxu0 }
 0x1b3   : > { %v1247_v6 = vadd.f32 %v3639_v18, %v1246_v24  ;;  %3205 = vmatprep.mubr.f32.mxu1 %v1475_v20 }
 0x1b4   : > { %3206 = vmatmul.mubr.f32.gmra.mrb[94].mxu1 %v1476_v22  ;;  %v1478_v26 = vmax.f32 %v1252_v23, 0.0 }
 0x1b5   : > { %v1477_v25 = vmax.f32 %v1247_v6, 0.0  ;;  %v2989_v11 = vpop.f32.mrb[104].mxu0 }
 0x1b6   : > { %v1262_v27 = vadd.f32 %v2989_v11, %v3639_v18  ;;  %v1256_v28 = vpop.f32.mrb[105].mxu0  ;;  %v3303_v11 = vld [vmem:[%s4198_s1 + $0x4] ss:$0 sm:$0xff] }
 0x1b7   : > { %v1257_v29 = vadd.f32 %v3639_v18, %v1256_v28  ;;  %3208 = vmatprep.mubr.f32.mxu1 %v1477_v25 }
 0x1b8   : > { %3209 = vmatmul.mubr.f32.gmra.mrb[96].mxu1 %v1478_v26  ;;  %v1480_v32 = vmax.f32 %v1262_v27, 0.0 }
 0x1b9   : > { %v1479_v30 = vmax.f32 %v1257_v29, 0.0  ;;  %v2992_v31 = vpop.f32.mrb[106].mxu0 }
 0x1ba   : > { %v1272_v10 = vadd.f32 %v2992_v31, %v3639_v18  ;;  %v1266_v33 = vpop.f32.mrb[107].mxu0 }
 0x1bb   : > { %v1267_v34 = vadd.f32 %v3639_v18, %v1266_v33  ;;  %3211 = vmatprep.mubr.f32.mxu1 %v1479_v30 }
 0x1bc   : > { %3212 = vmatmul.mubr.f32.gmra.mrb[98].mxu1 %v1480_v32  ;;  %v1482_v36 = vmax.f32 %v1272_v10, 0.0 }
 0x1bd   : > { %v1481_v35 = vmax.f32 %v1267_v34, 0.0  ;;  %v2995_v15 = vpop.f32.mrb[108].mxu0 }
 0x1be   : > { %v1282_v37 = vadd.f32 %v2995_v15, %v3639_v18  ;;  %v1276_v38 = vpop.f32.mrb[109].mxu0 }
 0x1bf   : > { %v1277_v39 = vadd.f32 %v3639_v18, %v1276_v38  ;;  %3214 = vmatprep.mubr.f32.mxu1 %v1481_v35 }
 0x1c0   : > { %3215 = vmatmul.mubr.f32.gmra.mrb[100].mxu1 %v1482_v36  ;;  %v1484_v42 = vmax.f32 %v1282_v37, 0.0 }
 0x1c1   : > { %v1483_v40 = vmax.f32 %v1277_v39, 0.0  ;;  %v2998_v41 = vpop.f32.mrb[110].mxu0 }
 0x1c2   : > { %v1292_v14 = vadd.f32 %v2998_v41, %v3639_v18  ;;  %v1286_v43 = vpop.f32.mrb[111].mxu0 }
 0x1c3   : > { %v1287_v44 = vadd.f32 %v3639_v18, %v1286_v43  ;;  %3217 = vmatprep.mubr.f32.mxu1 %v1483_v40 }
 0x1c4   : > { %3218 = vmatmul.mubr.f32.gmra.mrb[102].mxu1 %v1484_v42  ;;  %v1486_v47 = vmax.f32 %v1292_v14, 0.0 }
 0x1c5   : > { %v1485_v45 = vmax.f32 %v1287_v44, 0.0  ;;  %v3001_v46 = vpop.f32.mrb[112].mxu0 }
 0x1c6   : > { %v1302_v48 = vadd.f32 %v3001_v46, %v3639_v18  ;;  %v1296_v49 = vpop.f32.mrb[113].mxu0 }
 0x1c7   : > { %v1297_v50 = vadd.f32 %v3639_v18, %v1296_v49  ;;  %3220 = vmatprep.mubr.f32.mxu1 %v1485_v45 }
 0x1c8   : > { %3221 = vmatmul.mubr.f32.gmra.mrb[104].mxu1 %v1486_v47  ;;  %v1488_v54 = vmax.f32 %v1302_v48, 0.0 }
 0x1c9   : > { %v1487_v51 = vmax.f32 %v1297_v50, 0.0  ;;  %v3004_v52 = vpop.f32.mrb[114].mxu0 }
 0x1ca   : > { %v1312_v55 = vadd.f32 %v3004_v52, %v3639_v18  ;;  %v1306_v56 = vpop.f32.mrb[115].mxu0 }
 0x1cb   : > { %v1307_v57 = vadd.f32 %v3639_v18, %v1306_v56  ;;  %v3066_v58 = vpop.f32.mrb[0].mxu1  ;;  %3223 = vmatprep.mubr.f32.mxu1 %v1487_v51 }
 0x1cc   : > { %v1626_v59 = vadd.f32 %v3066_v58, %v3792_v53  ;;  %v1620_v60 = vpop.f32.mrb[1].mxu1  ;;  %3224 = vmatmul.mubr.f32.gmra.mrb[106].mxu1 %v1488_v54  ;;  %v1490_v0 = vmax.f32 %v1312_v55, 0.0 }
 0x1cd   : > { %v1489_v61 = vmax.f32 %v1307_v57, 0.0  ;;  %v1621_v62 = vadd.f32 %v3792_v53, %v1620_v60  ;;  %v3007_v63 = vpop.f32.mrb[116].mxu0 }
 0x1ce   : > { %2237 = vst.msk [vmem:[%s3800_s3 + $0x38] sm:$0xff] %vm2229_vm2, %v1626_v59  ;;  %v1322_v1 = vadd.f32 %v3007_v63, %v3639_v18  ;;  %v1316_v2 = vpop.f32.mrb[117].mxu0 }
 0x1cf   : > { %2236 = vst.msk [vmem:[%s3800_s3 + $0x30] sm:$0xff] %vm2229_vm2, %v1621_v62  ;;  %v1317_v3 = vadd.f32 %v3639_v18, %v1316_v2  ;;  %v3069_v4 = vpop.f32.mrb[2].mxu1  ;;  %3226 = vmatprep.mubr.f32.mxu1 %v1489_v61 }
 0x1d0   : > { %v1636_v5 = vadd.f32 %v3069_v4, %v3792_v53  ;;  %v1630_v8 = vpop.f32.mrb[3].mxu1  ;;  %3227 = vmatmul.mubr.f32.gmra.mrb[108].mxu1 %v1490_v0  ;;  %v1492_v16 = vmax.f32 %v1322_v1, 0.0 }
 0x1d1   : > { %v1491_v9 = vmax.f32 %v1317_v3, 0.0  ;;  %v1631_v12 = vadd.f32 %v3792_v53, %v1630_v8  ;;  %v3010_v13 = vpop.f32.mrb[118].mxu0 }
 0x1d2   : > { %2239 = vst.msk [vmem:[%s3800_s3 + $0x48] sm:$0xff] %vm2229_vm2, %v1636_v5  ;;  %v1332_v7 = vadd.f32 %v3010_v13, %v3639_v18  ;;  %v1326_v17 = vpop.f32.mrb[119].mxu0 }
 0x1d3   : > { %2238 = vst.msk [vmem:[%s3800_s3 + $0x40] sm:$0xff] %vm2229_vm2, %v1631_v12  ;;  %v1327_v19 = vadd.f32 %v3639_v18, %v1326_v17  ;;  %v3072_v20 = vpop.f32.mrb[4].mxu1  ;;  %3229 = vmatprep.mubr.f32.mxu1 %v1491_v9 }
 0x1d4   : > { %v1646_v21 = vadd.f32 %v3072_v20, %v3792_v53  ;;  %v1640_v22 = vpop.f32.mrb[5].mxu1  ;;  %3230 = vmatmul.mubr.f32.gmra.mrb[110].mxu1 %v1492_v16  ;;  %v1494_v25 = vmax.f32 %v1332_v7, 0.0 }
 0x1d5   : > { %v1493_v23 = vmax.f32 %v1327_v19, 0.0  ;;  %v1641_v24 = vadd.f32 %v3792_v53, %v1640_v22  ;;  %v3013_v6 = vpop.f32.mrb[120].mxu0 }
 0x1d6   : > { %2241 = vst.msk [vmem:[%s3800_s3 + $0x58] sm:$0xff] %vm2229_vm2, %v1646_v21  ;;  %v1342_v26 = vadd.f32 %v3303_v11, %v3013_v6  ;;  %v1336_v18 = vpop.f32.mrb[121].mxu0 }
 0x1d7   : > { %2240 = vst.msk [vmem:[%s3800_s3 + $0x50] sm:$0xff] %vm2229_vm2, %v1641_v24  ;;  %v1337_v27 = vadd.f32 %v3303_v11, %v1336_v18  ;;  %v3075_v28 = vpop.f32.mrb[6].mxu1  ;;  %3232 = vmatprep.mubr.f32.mxu1 %v1493_v23 }
 0x1d8   : > { %v1656_v29 = vadd.f32 %v3075_v28, %v3792_v53  ;;  %v1650_v30 = vpop.f32.mrb[7].mxu1  ;;  %3233 = vmatmul.mubr.f32.gmra.mrb[112].mxu1 %v1494_v25  ;;  %v1496_v33 = vmax.f32 %v1342_v26, 0.0 }
 0x1d9   : > { %v1495_v31 = vmax.f32 %v1337_v27, 0.0  ;;  %v1651_v32 = vadd.f32 %v3792_v53, %v1650_v30  ;;  %v3016_v10 = vpop.f32.mrb[122].mxu0 }
 0x1da   : > { %2243 = vst.msk [vmem:[%s3800_s3 + $0x68] sm:$0xff] %vm2229_vm2, %v1656_v29  ;;  %v1352_v34 = vadd.f32 %v3303_v11, %v3016_v10  ;;  %v1346_v35 = vpop.f32.mrb[123].mxu0 }
 0x1db   : > { %2242 = vst.msk [vmem:[%s3800_s3 + $0x60] sm:$0xff] %vm2229_vm2, %v1651_v32  ;;  %v1347_v15 = vadd.f32 %v3303_v11, %v1346_v35  ;;  %v3078_v36 = vpop.f32.mrb[8].mxu1  ;;  %3235 = vmatprep.mubr.f32.mxu1 %v1495_v31 }
 0x1dc   : > { %v1666_v37 = vadd.f32 %v3078_v36, %v3792_v53  ;;  %v1660_v38 = vpop.f32.mrb[9].mxu1  ;;  %3236 = vmatmul.mubr.f32.gmra.mrb[114].mxu1 %v1496_v33  ;;  %v1498_v42 = vmax.f32 %v1352_v34, 0.0 }
 0x1dd   : > { %v1497_v39 = vmax.f32 %v1347_v15, 0.0  ;;  %v1661_v40 = vadd.f32 %v3792_v53, %v1660_v38  ;;  %v3019_v41 = vpop.f32.mrb[124].mxu0 }
 0x1de   : > { %2245 = vst.msk [vmem:[%s3800_s3 + $0x78] sm:$0xff] %vm2229_vm2, %v1666_v37  ;;  %v1362_v14 = vadd.f32 %v3303_v11, %v3019_v41  ;;  %v1356_v43 = vpop.f32.mrb[125].mxu0 }
 0x1df   : > { %2244 = vst.msk [vmem:[%s3800_s3 + $0x70] sm:$0xff] %vm2229_vm2, %v1661_v40  ;;  %v1357_v44 = vadd.f32 %v3303_v11, %v1356_v43  ;;  %v3081_v45 = vpop.f32.mrb[10].mxu1  ;;  %3238 = vmatprep.mubr.f32.mxu1 %v1497_v39 }
 0x1e0   : > { %v1676_v46 = vadd.f32 %v3081_v45, %v3792_v53  ;;  %v1670_v47 = vpop.f32.mrb[11].mxu1  ;;  %3239 = vmatmul.mubr.f32.gmra.mrb[116].mxu1 %v1498_v42  ;;  %v1500_v51 = vmax.f32 %v1362_v14, 0.0 }
 0x1e1   : > { %v1499_v48 = vmax.f32 %v1357_v44, 0.0  ;;  %v1671_v49 = vadd.f32 %v3792_v53, %v1670_v47  ;;  %v3022_v50 = vpop.f32.mrb[126].mxu0 }
 0x1e2   : > { %2247 = vst.msk [vmem:[%s3800_s3 + $0x88] sm:$0xff] %vm2229_vm2, %v1676_v46  ;;  %v1372_v52 = vadd.f32 %v3303_v11, %v3022_v50  ;;  %v1366_v54 = vpop.f32.mrb[127].mxu0 }
 0x1e3   : > { %2246 = vst.msk [vmem:[%s3800_s3 + $0x80] sm:$0xff] %vm2229_vm2, %v1671_v49  ;;  %v1367_v55 = vadd.f32 %v3303_v11, %v1366_v54  ;;  %v3084_v56 = vpop.f32.mrb[12].mxu1  ;;  %3241 = vmatprep.mubr.f32.mxu1 %v1499_v48 }
 0x1e4   : > { %v1686_v57 = vadd.f32 %v3084_v56, %v3792_v53  ;;  %v1680_v58 = vpop.f32.mrb[13].mxu1  ;;  %3242 = vmatmul.mubr.f32.gmra.mrb[118].mxu1 %v1500_v51  ;;  %v1502_v62 = vmax.f32 %v1372_v52, 0.0 }
 0x1e5   : > { %v1501_v59 = vmax.f32 %v1367_v55, 0.0  ;;  %v1681_v60 = vadd.f32 %v3792_v53, %v1680_v58  ;;  %v3057_v61 = vpop.f32.mrb[128].mxu0 }
 0x1e6   : > { %2249 = vst.msk [vmem:[%s3800_s3 + $0x98] sm:$0xff] %vm2229_vm2, %v1686_v57  ;;  %v1596_v63 = vadd.f32 %v3057_v61, %v3792_v53  ;;  %v1590_v0 = vpop.f32.mrb[129].mxu0 }
 0x1e7   : > { %2248 = vst.msk [vmem:[%s3800_s3 + $0x90] sm:$0xff] %vm2229_vm2, %v1681_v60  ;;  %v1591_v1 = vadd.f32 %v3792_v53, %v1590_v0  ;;  %v3087_v2 = vpop.f32.mrb[14].mxu1  ;;  %3244 = vmatprep.mubr.f32.mxu1 %v1501_v59 }
 0x1e8   : > { %2231 = vst.msk [vmem:[%s3800_s3 + $0x8] sm:$0xff] %vm2229_vm2, %v1596_v63  ;;  %v1696_v3 = vadd.f32 %v3087_v2, %v3792_v53  ;;  %v1690_v4 = vpop.f32.mrb[15].mxu1  ;;  %3245 = vmatmul.mubr.f32.gmra.mrb[120].mxu1 %v1502_v62 }
 0x1e9   : > { %2230 = vst.msk [vmem:[%s3800_s3] sm:$0xff] %vm2229_vm2, %v1591_v1  ;;  %v1691_v5 = vadd.f32 %v3792_v53, %v1690_v4  ;;  %v3060_v8 = vpop.f32.mrb[130].mxu0 }
 0x1ea   : > { %2251 = vst.msk [vmem:[%s3800_s3 + $0xa8] sm:$0xff] %vm2229_vm2, %v1696_v3  ;;  %v1606_v9 = vadd.f32 %v3060_v8, %v3792_v53  ;;  %v1600_v12 = vpop.f32.mrb[131].mxu0 }
 0x1eb   : > { %2250 = vst.msk [vmem:[%s3800_s3 + $0xa0] sm:$0xff] %vm2229_vm2, %v1691_v5  ;;  %v1601_v13 = vadd.f32 %v3792_v53, %v1600_v12  ;;  %v3090_v16 = vpop.f32.mrb[16].mxu1 }
 0x1ec   : > { %2233 = vst.msk [vmem:[%s3800_s3 + $0x18] sm:$0xff] %vm2229_vm2, %v1606_v9  ;;  %v1706_v7 = vadd.f32 %v3090_v16, %v3792_v53  ;;  %v1700_v17 = vpop.f32.mrb[17].mxu1 }
 0x1ed   : > { %2232 = vst.msk [vmem:[%s3800_s3 + $0x10] sm:$0xff] %vm2229_vm2, %v1601_v13  ;;  %v1701_v19 = vadd.f32 %v3792_v53, %v1700_v17  ;;  %v3063_v20 = vpop.f32.mrb[132].mxu0 }
 0x1ee   : > { %2253 = vst.msk [vmem:[%s3800_s3 + $0xb8] sm:$0xff] %vm2229_vm2, %v1706_v7  ;;  %v1616_v21 = vadd.f32 %v3063_v20, %v3792_v53  ;;  %v1610_v22 = vpop.f32.mrb[133].mxu0 }
 0x1ef   : > { %2252 = vst.msk [vmem:[%s3800_s3 + $0xb0] sm:$0xff] %vm2229_vm2, %v1701_v19  ;;  %v1611_v23 = vadd.f32 %v3792_v53, %v1610_v22  ;;  %v3093_v24 = vpop.f32.mrb[18].mxu1 }
 0x1f0   : > { %2235 = vst.msk [vmem:[%s3800_s3 + $0x28] sm:$0xff] %vm2229_vm2, %v1616_v21  ;;  %v1716_v6 = vadd.f32 %v3093_v24, %v3792_v53  ;;  %v1710_v25 = vpop.f32.mrb[19].mxu1 }
 0x1f1   : > { %2234 = vst.msk [vmem:[%s3800_s3 + $0x20] sm:$0xff] %vm2229_vm2, %v1611_v23  ;;  %v1711_v11 = vadd.f32 %v3792_v53, %v1710_v25 }
 0x1f2   : > { %2255 = vst.msk [vmem:[%s3800_s3 + $0xc8] sm:$0xff] %vm2229_vm2, %v1716_v6 }
 0x1f3   : > { %2254 = vst.msk [vmem:[%s3800_s3 + $0xc0] sm:$0xff] %vm2229_vm2, %v1711_v11  ;;  %v3096_v26 = vpop.f32.mrb[20].mxu1 }
 0x1f4   : > { %v1726_v18 = vadd.f32 %v3096_v26, %v3792_v53  ;;  %v1720_v27 = vpop.f32.mrb[21].mxu1 }
 0x1f5   : > { %v1721_v28 = vadd.f32 %v3792_v53, %v1720_v27 }
 0x1f6   : > { %2257 = vst.msk [vmem:[%s3800_s3 + $0xd8] sm:$0xff] %vm2229_vm2, %v1726_v18 }
 0x1f7   : > { %2256 = vst.msk [vmem:[%s3800_s3 + $0xd0] sm:$0xff] %vm2229_vm2, %v1721_v28  ;;  %v3099_v29 = vpop.f32.mrb[22].mxu1 }
 0x1f8   : > { %v1736_v30 = vadd.f32 %v3099_v29, %v3792_v53  ;;  %v1730_v31 = vpop.f32.mrb[23].mxu1 }
 0x1f9   : > { %v1731_v32 = vadd.f32 %v3792_v53, %v1730_v31 }
 0x1fa   : > { %2259 = vst.msk [vmem:[%s3800_s3 + $0xe8] sm:$0xff] %vm2229_vm2, %v1736_v30 }
 0x1fb   : > { %2258 = vst.msk [vmem:[%s3800_s3 + $0xe0] sm:$0xff] %vm2229_vm2, %v1731_v32  ;;  %v3102_v10 = vpop.f32.mrb[24].mxu1 }
 0x1fc   : > { %v1746_v33 = vadd.f32 %v3102_v10, %v3792_v53  ;;  %v1740_v34 = vpop.f32.mrb[25].mxu1 }
 0x1fd   : > { %v1741_v35 = vadd.f32 %v3792_v53, %v1740_v34 }
 0x1fe   : > { %2261 = vst.msk [vmem:[%s3800_s3 + $0xf8] sm:$0xff] %vm2229_vm2, %v1746_v33 }
 0x1ff   : > { %2260 = vst.msk [vmem:[%s3800_s3 + $0xf0] sm:$0xff] %vm2229_vm2, %v1741_v35  ;;  %v3105_v15 = vpop.f32.mrb[26].mxu1 }
 0x200   : > { %v1756_v36 = vadd.f32 %v3105_v15, %v3792_v53  ;;  %v1750_v37 = vpop.f32.mrb[27].mxu1 }
 0x201   : > { %v1751_v38 = vadd.f32 %v3792_v53, %v1750_v37 }
 0x202   : > { %2263 = vst.msk [vmem:[%s3800_s3 + $0x108] sm:$0xff] %vm2229_vm2, %v1756_v36 }
 0x203   : > { %2262 = vst.msk [vmem:[%s3800_s3 + $0x100] sm:$0xff] %vm2229_vm2, %v1751_v38  ;;  %v3108_v39 = vpop.f32.mrb[28].mxu1 }
 0x204   : > { %v1766_v40 = vadd.f32 %v3108_v39, %v3792_v53  ;;  %v1760_v41 = vpop.f32.mrb[29].mxu1 }
 0x205   : > { %v1761_v42 = vadd.f32 %v3792_v53, %v1760_v41 }
 0x206   : > { %2265 = vst.msk [vmem:[%s3800_s3 + $0x118] sm:$0xff] %vm2229_vm2, %v1766_v40 }
 0x207   : > { %2264 = vst.msk [vmem:[%s3800_s3 + $0x110] sm:$0xff] %vm2229_vm2, %v1761_v42  ;;  %v3111_v14 = vpop.f32.mrb[30].mxu1 }
 0x208   : > { %v1776_v43 = vadd.f32 %v3111_v14, %v3792_v53  ;;  %v1770_v44 = vpop.f32.mrb[31].mxu1 }
 0x209   : > { %v1771_v45 = vadd.f32 %v3792_v53, %v1770_v44 }
 0x20a   : > { %2267 = vst.msk [vmem:[%s3800_s3 + $0x128] sm:$0xff] %vm2229_vm2, %v1776_v43 }
 0x20b   : > { %2266 = vst.msk [vmem:[%s3800_s3 + $0x120] sm:$0xff] %vm2229_vm2, %v1771_v45  ;;  %v3114_v46 = vpop.f32.mrb[32].mxu1 }
 0x20c   : > { %v1786_v47 = vadd.f32 %v3114_v46, %v3792_v53  ;;  %v1780_v48 = vpop.f32.mrb[33].mxu1 }
 0x20d   : > { %v1781_v49 = vadd.f32 %v3792_v53, %v1780_v48 }
 0x20e   : > { %2269 = vst.msk [vmem:[%s3800_s3 + $0x138] sm:$0xff] %vm2229_vm2, %v1786_v47 }
 0x20f   : > { %2268 = vst.msk [vmem:[%s3800_s3 + $0x130] sm:$0xff] %vm2229_vm2, %v1781_v49  ;;  %v3117_v50 = vpop.f32.mrb[34].mxu1 }
 0x210   : > { %v1796_v51 = vadd.f32 %v3117_v50, %v3792_v53  ;;  %v1790_v52 = vpop.f32.mrb[35].mxu1 }
 0x211   : > { %v1791_v54 = vadd.f32 %v3792_v53, %v1790_v52 }
 0x212   : > { %2271 = vst.msk [vmem:[%s3800_s3 + $0x148] sm:$0xff] %vm2229_vm2, %v1796_v51 }
 0x213   : > { %2270 = vst.msk [vmem:[%s3800_s3 + $0x140] sm:$0xff] %vm2229_vm2, %v1791_v54  ;;  %v3120_v55 = vpop.f32.mrb[36].mxu1 }
 0x214   : > { %v1806_v56 = vadd.f32 %v3120_v55, %v3792_v53  ;;  %v1800_v57 = vpop.f32.mrb[37].mxu1 }
 0x215   : > { %v1801_v58 = vadd.f32 %v3792_v53, %v1800_v57 }
 0x216   : > { %2273 = vst.msk [vmem:[%s3800_s3 + $0x158] sm:$0xff] %vm2229_vm2, %v1806_v56 }
 0x217   : > { %2272 = vst.msk [vmem:[%s3800_s3 + $0x150] sm:$0xff] %vm2229_vm2, %v1801_v58  ;;  %v3123_v59 = vpop.f32.mrb[38].mxu1 }
 0x218   : > { %v1816_v60 = vadd.f32 %v3123_v59, %v3792_v53  ;;  %v1810_v61 = vpop.f32.mrb[39].mxu1 }
 0x219   : > { %v1811_v62 = vadd.f32 %v3792_v53, %v1810_v61 }
 0x21a   : > { %2275 = vst.msk [vmem:[%s3800_s3 + $0x168] sm:$0xff] %vm2229_vm2, %v1816_v60 }
 0x21b   : > { %2274 = vst.msk [vmem:[%s3800_s3 + $0x160] sm:$0xff] %vm2229_vm2, %v1811_v62  ;;  %v3126_v63 = vpop.f32.mrb[40].mxu1 }
 0x21c   : > { %v1826_v0 = vadd.f32 %v3126_v63, %v3792_v53  ;;  %v1820_v1 = vpop.f32.mrb[41].mxu1 }
 0x21d   : > { %v1821_v2 = vadd.f32 %v3792_v53, %v1820_v1 }
 0x21e   : > { %2277 = vst.msk [vmem:[%s3800_s3 + $0x178] sm:$0xff] %vm2229_vm2, %v1826_v0 }
 0x21f   : > { %2276 = vst.msk [vmem:[%s3800_s3 + $0x170] sm:$0xff] %vm2229_vm2, %v1821_v2  ;;  %v3129_v3 = vpop.f32.mrb[42].mxu1 }
 0x220   : > { %v1836_v4 = vadd.f32 %v3129_v3, %v3792_v53  ;;  %v1830_v5 = vpop.f32.mrb[43].mxu1 }
 0x221   : > { %v1831_v8 = vadd.f32 %v3792_v53, %v1830_v5 }
 0x222   : > { %2279 = vst.msk [vmem:[%s3800_s3 + $0x188] sm:$0xff] %vm2229_vm2, %v1836_v4 }
 0x223   : > { %2278 = vst.msk [vmem:[%s3800_s3 + $0x180] sm:$0xff] %vm2229_vm2, %v1831_v8  ;;  %v3132_v9 = vpop.f32.mrb[44].mxu1 }
 0x224   : > { %v1846_v12 = vadd.f32 %v3132_v9, %v3792_v53  ;;  %v1840_v13 = vpop.f32.mrb[45].mxu1 }
 0x225   : > { %v1841_v16 = vadd.f32 %v3792_v53, %v1840_v13 }
 0x226   : > { %2281 = vst.msk [vmem:[%s3800_s3 + $0x198] sm:$0xff] %vm2229_vm2, %v1846_v12 }
 0x227   : > { %2280 = vst.msk [vmem:[%s3800_s3 + $0x190] sm:$0xff] %vm2229_vm2, %v1841_v16  ;;  %v3135_v7 = vpop.f32.mrb[46].mxu1 }
 0x228   : > { %v1856_v17 = vadd.f32 %v3135_v7, %v3792_v53  ;;  %v1850_v19 = vpop.f32.mrb[47].mxu1 }
 0x229   : > { %v1851_v20 = vadd.f32 %v3792_v53, %v1850_v19 }
 0x22a   : > { %2283 = vst.msk [vmem:[%s3800_s3 + $0x1a8] sm:$0xff] %vm2229_vm2, %v1856_v17 }
 0x22b   : > { %2282 = vst.msk [vmem:[%s3800_s3 + $0x1a0] sm:$0xff] %vm2229_vm2, %v1851_v20  ;;  %v3138_v21 = vpop.f32.mrb[48].mxu1 }
 0x22c   : > { %v1866_v22 = vadd.f32 %v3138_v21, %v3792_v53  ;;  %v1860_v23 = vpop.f32.mrb[49].mxu1 }
 0x22d   : > { %v1861_v24 = vadd.f32 %v3792_v53, %v1860_v23 }
 0x22e   : > { %2285 = vst.msk [vmem:[%s3800_s3 + $0x1b8] sm:$0xff] %vm2229_vm2, %v1866_v22 }
 0x22f   : > { %2284 = vst.msk [vmem:[%s3800_s3 + $0x1b0] sm:$0xff] %vm2229_vm2, %v1861_v24  ;;  %v3141_v6 = vpop.f32.mrb[50].mxu1 }
 0x230   : > { %v1876_v25 = vadd.f32 %v3141_v6, %v3792_v53  ;;  %v1870_v11 = vpop.f32.mrb[51].mxu1 }
 0x231   : > { %v1871_v26 = vadd.f32 %v3792_v53, %v1870_v11 }
 0x232   : > { %2287 = vst.msk [vmem:[%s3800_s3 + $0x1c8] sm:$0xff] %vm2229_vm2, %v1876_v25 }
 0x233   : > { %2286 = vst.msk [vmem:[%s3800_s3 + $0x1c0] sm:$0xff] %vm2229_vm2, %v1871_v26  ;;  %v3144_v18 = vpop.f32.mrb[52].mxu1 }
 0x234   : > { %v1886_v27 = vadd.f32 %v3144_v18, %v3792_v53  ;;  %v1880_v28 = vpop.f32.mrb[53].mxu1 }
 0x235   : > { %v1881_v29 = vadd.f32 %v3792_v53, %v1880_v28 }
 0x236   : > { %2289 = vst.msk [vmem:[%s3800_s3 + $0x1d8] sm:$0xff] %vm2229_vm2, %v1886_v27 }
 0x237   : > { %2288 = vst.msk [vmem:[%s3800_s3 + $0x1d0] sm:$0xff] %vm2229_vm2, %v1881_v29  ;;  %v3147_v30 = vpop.f32.mrb[54].mxu1 }
 0x238   : > { %v1896_v31 = vadd.f32 %v3147_v30, %v3792_v53  ;;  %v1890_v32 = vpop.f32.mrb[55].mxu1 }
 0x239   : > { %v1891_v10 = vadd.f32 %v3792_v53, %v1890_v32 }
 0x23a   : > { %2291 = vst.msk [vmem:[%s3800_s3 + $0x1e8] sm:$0xff] %vm2229_vm2, %v1896_v31 }
 0x23b   : > { %2290 = vst.msk [vmem:[%s3800_s3 + $0x1e0] sm:$0xff] %vm2229_vm2, %v1891_v10  ;;  %v3150_v33 = vpop.f32.mrb[56].mxu1 }
 0x23c   : > { %v1906_v34 = vadd.f32 %v3150_v33, %v3792_v53  ;;  %v1900_v35 = vpop.f32.mrb[57].mxu1 }
 0x23d   : > { %v1901_v15 = vadd.f32 %v3792_v53, %v1900_v35 }
 0x23e   : > { %2293 = vst.msk [vmem:[%s3800_s3 + $0x1f8] sm:$0xff] %vm2229_vm2, %v1906_v34 }
 0x23f   : > { %2292 = vst.msk [vmem:[%s3800_s3 + $0x1f0] sm:$0xff] %vm2229_vm2, %v1901_v15  ;;  %v3153_v36 = vpop.f32.mrb[58].mxu1 }
 0x240   : > { %v1916_v37 = vadd.f32 %v3153_v36, %v3792_v53  ;;  %v1910_v38 = vpop.f32.mrb[59].mxu1 }
 0x241   : > { %v1911_v39 = vadd.f32 %v3792_v53, %v1910_v38 }
 0x242   : > { %2295 = vst.msk [vmem:[%s3800_s3 + $0x208] sm:$0xff] %vm2229_vm2, %v1916_v37 }
 0x243   : > { %2294 = vst.msk [vmem:[%s3800_s3 + $0x200] sm:$0xff] %vm2229_vm2, %v1911_v39  ;;  %v3156_v40 = vpop.f32.mrb[60].mxu1 }
 0x244   : > { %v1926_v41 = vadd.f32 %v3156_v40, %v3792_v53  ;;  %v1920_v42 = vpop.f32.mrb[61].mxu1 }
 0x245   : > { %v1921_v14 = vadd.f32 %v3792_v53, %v1920_v42 }
 0x246   : > { %2297 = vst.msk [vmem:[%s3800_s3 + $0x218] sm:$0xff] %vm2229_vm2, %v1926_v41 }
 0x247   : > { %2296 = vst.msk [vmem:[%s3800_s3 + $0x210] sm:$0xff] %vm2229_vm2, %v1921_v14  ;;  %v3159_v43 = vpop.f32.mrb[62].mxu1 }
 0x248   : > { %v1936_v44 = vadd.f32 %v3159_v43, %v3792_v53  ;;  %v1930_v45 = vpop.f32.mrb[63].mxu1 }
 0x249   : > { %v1931_v46 = vadd.f32 %v3792_v53, %v1930_v45 }
 0x24a   : > { %2299 = vst.msk [vmem:[%s3800_s3 + $0x228] sm:$0xff] %vm2229_vm2, %v1936_v44 }
 0x24b   : > { %2298 = vst.msk [vmem:[%s3800_s3 + $0x220] sm:$0xff] %vm2229_vm2, %v1931_v46  ;;  %v3162_v47 = vpop.f32.mrb[64].mxu1 }
 0x24c   : > { %v1946_v48 = vadd.f32 %v3162_v47, %v3792_v53  ;;  %v1940_v49 = vpop.f32.mrb[65].mxu1 }
 0x24d   : > { %v1941_v50 = vadd.f32 %v3792_v53, %v1940_v49 }
 0x24e   : > { %2301 = vst.msk [vmem:[%s3800_s3 + $0x238] sm:$0xff] %vm2229_vm2, %v1946_v48 }
 0x24f   : > { %2300 = vst.msk [vmem:[%s3800_s3 + $0x230] sm:$0xff] %vm2229_vm2, %v1941_v50  ;;  %v3165_v51 = vpop.f32.mrb[66].mxu1 }
 0x250   : > { %v1956_v52 = vadd.f32 %v3165_v51, %v3792_v53  ;;  %v1950_v54 = vpop.f32.mrb[67].mxu1 }
 0x251   : > { %v1951_v55 = vadd.f32 %v3792_v53, %v1950_v54 }
 0x252   : > { %2303 = vst.msk [vmem:[%s3800_s3 + $0x248] sm:$0xff] %vm2229_vm2, %v1956_v52 }
 0x253   : > { %2302 = vst.msk [vmem:[%s3800_s3 + $0x240] sm:$0xff] %vm2229_vm2, %v1951_v55  ;;  %v3168_v56 = vpop.f32.mrb[68].mxu1 }
 0x254   : > { %v1966_v57 = vadd.f32 %v3168_v56, %v3792_v53  ;;  %v1960_v58 = vpop.f32.mrb[69].mxu1 }
 0x255   : > { %v1961_v59 = vadd.f32 %v3792_v53, %v1960_v58 }
 0x256   : > { %2305 = vst.msk [vmem:[%s3800_s3 + $0x258] sm:$0xff] %vm2229_vm2, %v1966_v57 }
 0x257   : > { %2304 = vst.msk [vmem:[%s3800_s3 + $0x250] sm:$0xff] %vm2229_vm2, %v1961_v59  ;;  %v3171_v60 = vpop.f32.mrb[70].mxu1 }
 0x258   : > { %v1976_v61 = vadd.f32 %v3171_v60, %v3792_v53  ;;  %v1970_v62 = vpop.f32.mrb[71].mxu1 }
 0x259   : > { %v1971_v63 = vadd.f32 %v3792_v53, %v1970_v62 }
 0x25a   : > { %2307 = vst.msk [vmem:[%s3800_s3 + $0x268] sm:$0xff] %vm2229_vm2, %v1976_v61 }
 0x25b   : > { %2306 = vst.msk [vmem:[%s3800_s3 + $0x260] sm:$0xff] %vm2229_vm2, %v1971_v63  ;;  %v3174_v0 = vpop.f32.mrb[72].mxu1 }
 0x25c   : > { %v1986_v1 = vadd.f32 %v3174_v0, %v3792_v53  ;;  %v1980_v2 = vpop.f32.mrb[73].mxu1 }
 0x25d   : > { %v1981_v3 = vadd.f32 %v3792_v53, %v1980_v2 }
 0x25e   : > { %2309 = vst.msk [vmem:[%s3800_s3 + $0x278] sm:$0xff] %vm2229_vm2, %v1986_v1 }
 0x25f   : > { %2308 = vst.msk [vmem:[%s3800_s3 + $0x270] sm:$0xff] %vm2229_vm2, %v1981_v3  ;;  %v3177_v4 = vpop.f32.mrb[74].mxu1 }
 0x260   : > { %v1996_v5 = vadd.f32 %v3177_v4, %v3792_v53  ;;  %v1990_v8 = vpop.f32.mrb[75].mxu1 }
 0x261   : > { %v1991_v9 = vadd.f32 %v3792_v53, %v1990_v8 }
 0x262   : > { %2311 = vst.msk [vmem:[%s3800_s3 + $0x288] sm:$0xff] %vm2229_vm2, %v1996_v5 }
 0x263   : > { %2310 = vst.msk [vmem:[%s3800_s3 + $0x280] sm:$0xff] %vm2229_vm2, %v1991_v9  ;;  %v3180_v12 = vpop.f32.mrb[76].mxu1 }
 0x264   : > { %v2006_v13 = vadd.f32 %v3180_v12, %v3792_v53  ;;  %v2000_v16 = vpop.f32.mrb[77].mxu1 }
 0x265   : > { %v2001_v7 = vadd.f32 %v3792_v53, %v2000_v16 }
 0x266   : > { %2313 = vst.msk [vmem:[%s3800_s3 + $0x298] sm:$0xff] %vm2229_vm2, %v2006_v13 }
 0x267   : > { %2312 = vst.msk [vmem:[%s3800_s3 + $0x290] sm:$0xff] %vm2229_vm2, %v2001_v7  ;;  %v3183_v17 = vpop.f32.mrb[78].mxu1 }
 0x268   : > { %v2016_v19 = vadd.f32 %v3183_v17, %v3792_v53  ;;  %v2010_v20 = vpop.f32.mrb[79].mxu1 }
 0x269   : > { %v2011_v21 = vadd.f32 %v3792_v53, %v2010_v20 }
 0x26a   : > { %2315 = vst.msk [vmem:[%s3800_s3 + $0x2a8] sm:$0xff] %vm2229_vm2, %v2016_v19 }
 0x26b   : > { %2314 = vst.msk [vmem:[%s3800_s3 + $0x2a0] sm:$0xff] %vm2229_vm2, %v2011_v21  ;;  %v3186_v22 = vpop.f32.mrb[80].mxu1 }
 0x26c   : > { %v2026_v23 = vadd.f32 %v3186_v22, %v3792_v53  ;;  %v2020_v24 = vpop.f32.mrb[81].mxu1 }
 0x26d   : > { %v2021_v6 = vadd.f32 %v3792_v53, %v2020_v24 }
 0x26e   : > { %2317 = vst.msk [vmem:[%s3800_s3 + $0x2b8] sm:$0xff] %vm2229_vm2, %v2026_v23 }
 0x26f   : > { %2316 = vst.msk [vmem:[%s3800_s3 + $0x2b0] sm:$0xff] %vm2229_vm2, %v2021_v6  ;;  %v3189_v25 = vpop.f32.mrb[82].mxu1 }
 0x270   : > { %v2036_v11 = vadd.f32 %v3189_v25, %v3792_v53  ;;  %v2030_v26 = vpop.f32.mrb[83].mxu1 }
 0x271   : > { %v2031_v18 = vadd.f32 %v3792_v53, %v2030_v26 }
 0x272   : > { %2319 = vst.msk [vmem:[%s3800_s3 + $0x2c8] sm:$0xff] %vm2229_vm2, %v2036_v11 }
 0x273   : > { %2318 = vst.msk [vmem:[%s3800_s3 + $0x2c0] sm:$0xff] %vm2229_vm2, %v2031_v18  ;;  %v3192_v27 = vpop.f32.mrb[84].mxu1 }
 0x274   : > { %v2046_v28 = vadd.f32 %v3192_v27, %v3792_v53  ;;  %v2040_v29 = vpop.f32.mrb[85].mxu1 }
 0x275   : > { %v2041_v30 = vadd.f32 %v3792_v53, %v2040_v29 }
 0x276   : > { %2321 = vst.msk [vmem:[%s3800_s3 + $0x2d8] sm:$0xff] %vm2229_vm2, %v2046_v28 }
 0x277   : > { %2320 = vst.msk [vmem:[%s3800_s3 + $0x2d0] sm:$0xff] %vm2229_vm2, %v2041_v30  ;;  %v3195_v31 = vpop.f32.mrb[86].mxu1 }
 0x278   : > { %v2056_v32 = vadd.f32 %v3195_v31, %v3792_v53  ;;  %v2050_v10 = vpop.f32.mrb[87].mxu1 }
 0x279   : > { %v2051_v33 = vadd.f32 %v3792_v53, %v2050_v10 }
 0x27a   : > { %2323 = vst.msk [vmem:[%s3800_s3 + $0x2e8] sm:$0xff] %vm2229_vm2, %v2056_v32 }
 0x27b   : > { %2322 = vst.msk [vmem:[%s3800_s3 + $0x2e0] sm:$0xff] %vm2229_vm2, %v2051_v33  ;;  %v3198_v34 = vpop.f32.mrb[88].mxu1 }
 0x27c   : > { %v2066_v35 = vadd.f32 %v3198_v34, %v3792_v53  ;;  %v2060_v15 = vpop.f32.mrb[89].mxu1 }
 0x27d   : > { %v2061_v36 = vadd.f32 %v3792_v53, %v2060_v15 }
 0x27e   : > { %2325 = vst.msk [vmem:[%s3800_s3 + $0x2f8] sm:$0xff] %vm2229_vm2, %v2066_v35 }
 0x27f   : > { %2324 = vst.msk [vmem:[%s3800_s3 + $0x2f0] sm:$0xff] %vm2229_vm2, %v2061_v36  ;;  %v3201_v37 = vpop.f32.mrb[90].mxu1 }
 0x280   : > { %v2076_v38 = vadd.f32 %v3201_v37, %v3792_v53  ;;  %v2070_v39 = vpop.f32.mrb[91].mxu1 }
 0x281   : > { %v2071_v40 = vadd.f32 %v3792_v53, %v2070_v39 }
 0x282   : > { %2327 = vst.msk [vmem:[%s3800_s3 + $0x308] sm:$0xff] %vm2229_vm2, %v2076_v38 }
 0x283   : > { %2326 = vst.msk [vmem:[%s3800_s3 + $0x300] sm:$0xff] %vm2229_vm2, %v2071_v40  ;;  %v3204_v41 = vpop.f32.mrb[92].mxu1 }
 0x284   : > { %v2086_v42 = vadd.f32 %v3204_v41, %v3792_v53  ;;  %v2080_v14 = vpop.f32.mrb[93].mxu1 }
 0x285   : > { %v2081_v43 = vadd.f32 %v3792_v53, %v2080_v14 }
 0x286   : > { %2329 = vst.msk [vmem:[%s3800_s3 + $0x318] sm:$0xff] %vm2229_vm2, %v2086_v42 }
 0x287   : > { %2328 = vst.msk [vmem:[%s3800_s3 + $0x310] sm:$0xff] %vm2229_vm2, %v2081_v43  ;;  %v3207_v44 = vpop.f32.mrb[94].mxu1 }
 0x288   : > { %v2096_v45 = vadd.f32 %v3207_v44, %v3792_v53  ;;  %v2090_v46 = vpop.f32.mrb[95].mxu1 }
 0x289   : > { %v2091_v47 = vadd.f32 %v3792_v53, %v2090_v46 }
 0x28a   : > { %2331 = vst.msk [vmem:[%s3800_s3 + $0x328] sm:$0xff] %vm2229_vm2, %v2096_v45 }
 0x28b   : > { %2330 = vst.msk [vmem:[%s3800_s3 + $0x320] sm:$0xff] %vm2229_vm2, %v2091_v47  ;;  %v3210_v48 = vpop.f32.mrb[96].mxu1 }
 0x28c   : > { %v2106_v49 = vadd.f32 %v3210_v48, %v3792_v53  ;;  %v2100_v50 = vpop.f32.mrb[97].mxu1 }
 0x28d   : > { %v2101_v51 = vadd.f32 %v3792_v53, %v2100_v50 }
 0x28e   : > { %2333 = vst.msk [vmem:[%s3800_s3 + $0x338] sm:$0xff] %vm2229_vm2, %v2106_v49 }
 0x28f   : > { %2332 = vst.msk [vmem:[%s3800_s3 + $0x330] sm:$0xff] %vm2229_vm2, %v2101_v51  ;;  %v3213_v52 = vpop.f32.mrb[98].mxu1 }
 0x290   : > { %v2116_v54 = vadd.f32 %v3213_v52, %v3792_v53  ;;  %v2110_v55 = vpop.f32.mrb[99].mxu1 }
 0x291   : > { %v2111_v56 = vadd.f32 %v3792_v53, %v2110_v55 }
 0x292   : > { %2335 = vst.msk [vmem:[%s3800_s3 + $0x348] sm:$0xff] %vm2229_vm2, %v2116_v54 }
 0x293   : > { %2334 = vst.msk [vmem:[%s3800_s3 + $0x340] sm:$0xff] %vm2229_vm2, %v2111_v56  ;;  %v3216_v57 = vpop.f32.mrb[100].mxu1 }
 0x294   : > { %v2126_v58 = vadd.f32 %v3216_v57, %v3792_v53  ;;  %v2120_v59 = vpop.f32.mrb[101].mxu1 }
 0x295   : > { %v2121_v60 = vadd.f32 %v3792_v53, %v2120_v59 }
 0x296   : > { %2337 = vst.msk [vmem:[%s3800_s3 + $0x358] sm:$0xff] %vm2229_vm2, %v2126_v58 }
 0x297   : > { %2336 = vst.msk [vmem:[%s3800_s3 + $0x350] sm:$0xff] %vm2229_vm2, %v2121_v60  ;;  %v3219_v61 = vpop.f32.mrb[102].mxu1 }
 0x298   : > { %v2136_v62 = vadd.f32 %v3219_v61, %v3792_v53  ;;  %v2130_v63 = vpop.f32.mrb[103].mxu1 }
 0x299   : > { %v2131_v0 = vadd.f32 %v3792_v53, %v2130_v63 }
 0x29a   : > { %2339 = vst.msk [vmem:[%s3800_s3 + $0x368] sm:$0xff] %vm2229_vm2, %v2136_v62 }
 0x29b   : > { %2338 = vst.msk [vmem:[%s3800_s3 + $0x360] sm:$0xff] %vm2229_vm2, %v2131_v0  ;;  %v3222_v1 = vpop.f32.mrb[104].mxu1 }
 0x29c   : > { %v2146_v2 = vadd.f32 %v3222_v1, %v3792_v53  ;;  %v2140_v3 = vpop.f32.mrb[105].mxu1 }
 0x29d   : > { %v2141_v4 = vadd.f32 %v3792_v53, %v2140_v3 }
 0x29e   : > { %2341 = vst.msk [vmem:[%s3800_s3 + $0x378] sm:$0xff] %vm2229_vm2, %v2146_v2 }
 0x29f   : > { %2340 = vst.msk [vmem:[%s3800_s3 + $0x370] sm:$0xff] %vm2229_vm2, %v2141_v4  ;;  %v3225_v5 = vpop.f32.mrb[106].mxu1 }
 0x2a0   : > { %v2156_v8 = vadd.f32 %v3225_v5, %v3792_v53  ;;  %v2150_v9 = vpop.f32.mrb[107].mxu1 }
 0x2a1   : > { %v2151_v12 = vadd.f32 %v3792_v53, %v2150_v9 }
 0x2a2   : > { %2343 = vst.msk [vmem:[%s3800_s3 + $0x388] sm:$0xff] %vm2229_vm2, %v2156_v8 }
 0x2a3   : > { %2342 = vst.msk [vmem:[%s3800_s3 + $0x380] sm:$0xff] %vm2229_vm2, %v2151_v12  ;;  %v3228_v13 = vpop.f32.mrb[108].mxu1 }
 0x2a4   : > { %v2166_v16 = vadd.f32 %v3228_v13, %v3792_v53  ;;  %v2160_v7 = vpop.f32.mrb[109].mxu1 }
 0x2a5   : > { %v2161_v17 = vadd.f32 %v3792_v53, %v2160_v7 }
 0x2a6   : > { %2345 = vst.msk [vmem:[%s3800_s3 + $0x398] sm:$0xff] %vm2229_vm2, %v2166_v16 }
 0x2a7   : > { %2344 = vst.msk [vmem:[%s3800_s3 + $0x390] sm:$0xff] %vm2229_vm2, %v2161_v17  ;;  %v3231_v19 = vpop.f32.mrb[110].mxu1 }
 0x2a8   : > { %v2176_v20 = vadd.f32 %v3231_v19, %v3792_v53  ;;  %v2170_v21 = vpop.f32.mrb[111].mxu1 }
 0x2a9   : > { %v2171_v22 = vadd.f32 %v3792_v53, %v2170_v21 }
 0x2aa   : > { %2347 = vst.msk [vmem:[%s3800_s3 + $0x3a8] sm:$0xff] %vm2229_vm2, %v2176_v20 }
 0x2ab   : > { %2346 = vst.msk [vmem:[%s3800_s3 + $0x3a0] sm:$0xff] %vm2229_vm2, %v2171_v22  ;;  %v3234_v23 = vpop.f32.mrb[112].mxu1 }
 0x2ac   : > { %v2186_v24 = vadd.f32 %v3234_v23, %v3792_v53  ;;  %v2180_v6 = vpop.f32.mrb[113].mxu1 }
 0x2ad   : > { %v2181_v25 = vadd.f32 %v3792_v53, %v2180_v6 }
 0x2ae   : > { %2349 = vst.msk [vmem:[%s3800_s3 + $0x3b8] sm:$0xff] %vm2229_vm2, %v2186_v24 }
 0x2af   : > { %2348 = vst.msk [vmem:[%s3800_s3 + $0x3b0] sm:$0xff] %vm2229_vm2, %v2181_v25  ;;  %v3237_v11 = vpop.f32.mrb[114].mxu1 }
 0x2b0   : > { %v2196_v26 = vadd.f32 %v3237_v11, %v3792_v53  ;;  %v2190_v18 = vpop.f32.mrb[115].mxu1 }
 0x2b1   : > { %v2191_v27 = vadd.f32 %v3792_v53, %v2190_v18 }
 0x2b2   : > { %2351 = vst.msk [vmem:[%s3800_s3 + $0x3c8] sm:$0xff] %vm2229_vm2, %v2196_v26 }
 0x2b3   : > { %2350 = vst.msk [vmem:[%s3800_s3 + $0x3c0] sm:$0xff] %vm2229_vm2, %v2191_v27  ;;  %v3240_v28 = vpop.f32.mrb[116].mxu1 }
 0x2b4   : > { %v2206_v29 = vadd.f32 %v3240_v28, %v3792_v53  ;;  %v2200_v30 = vpop.f32.mrb[117].mxu1 }
 0x2b5   : > { %v2201_v31 = vadd.f32 %v3792_v53, %v2200_v30 }
 0x2b6   : > { %2353 = vst.msk [vmem:[%s3800_s3 + $0x3d8] sm:$0xff] %vm2229_vm2, %v2206_v29 }
 0x2b7   : > { %2352 = vst.msk [vmem:[%s3800_s3 + $0x3d0] sm:$0xff] %vm2229_vm2, %v2201_v31  ;;  %v3243_v32 = vpop.f32.mrb[118].mxu1 }
 0x2b8   : > { %v2216_v10 = vadd.f32 %v3243_v32, %v3792_v53  ;;  %v2210_v33 = vpop.f32.mrb[119].mxu1 }
 0x2b9   : > { %v2211_v34 = vadd.f32 %v3792_v53, %v2210_v33 }
 0x2ba   : > { %2355 = vst.msk [vmem:[%s3800_s3 + $0x3e8] sm:$0xff] %vm2229_vm2, %v2216_v10 }
 0x2bb   : > { %2354 = vst.msk [vmem:[%s3800_s3 + $0x3e0] sm:$0xff] %vm2229_vm2, %v2211_v34  ;;  %v3246_v35 = vpop.f32.mrb[120].mxu1 }
 0x2bc   : > { %v2226_v15 = vadd.f32 %v3246_v35, %v3792_v53  ;;  %v2220_v36 = vpop.f32.mrb[121].mxu1 }
 0x2bd   : > { %v2221_v37 = vadd.f32 %v3792_v53, %v2220_v36 }
 0x2be   : > { %2357 = vst.msk [vmem:[%s3800_s3 + $0x3f8] sm:$0xff] %vm2229_vm2, %v2226_v15 }
 0x2bf   : > { %2356 = vst.msk [vmem:[%s3800_s3 + $0x3f0] sm:$0xff] %vm2229_vm2, %v2221_v37 }
 0x2c0 PF: > { %s12_s9 = sadd.s32 1, %s3310_s9  }
 0x2c1   : > { %p9_p4 = scmp.ge.s32.totalorder %s12_s9, 4  }
 0x2c3   :  { %11 = sbr.rel (!%p9_p4) target bundleno = 1 (0x1), region = 58 }

</bundles_post_ra>
